<compile_context>
chip_gen: v7x
topology: tpu7x:2x2x1
jax: 0.10.0
libtpu: 0.0.40
codegen_flags: <defaults>
</compile_context>

<pallas_src>
import functools

import jax
import jax.numpy as jnp
from jax import lax
from jax.experimental import pallas as pl
from jax.experimental.pallas import tpu as pltpu

LANE = 128     # lane tile (last dim)
SUBLANE = 8    # sublane tile (second-to-last dim)


def _round_up(x, m):
    return (x + m - 1) // m * m


def _fused_lstm_kernel(*refs, num_layers, seq_len, b_pad, hidden, emb_dim,
                       unroll):
    """Multi-layer LSTM recurrence, fully resident in VMEM.

    refs layout (positional):
      inputs : emb (S,Bp,E) f32,
               wihT_0 .. wihT_{L-1}   (in_dim, 4H) bf16  (0.5-folded i/f/o),
               whhT_0 .. whhT_{L-1}   (H, 4H)     bf16  (0.5-folded i/f/o),
               bias_0 .. bias_{L-1}   (1, 4H)     f32   (0.5-folded i/f/o)
      outputs: hidden (L,Bp,H) f32, cell (L,Bp,H) f32
      scratch: act (S,Bp,H) f32, gx (S,Bp,4H) f32
    """
    H = hidden
    G = 4 * H

    idx = 0
    emb_ref = refs[idx]; idx += 1
    wih_refs = refs[idx:idx + num_layers]; idx += num_layers
    whh_refs = refs[idx:idx + num_layers]; idx += num_layers
    b_refs = refs[idx:idx + num_layers]; idx += num_layers
    hidden_ref = refs[idx]; idx += 1
    cell_ref = refs[idx]; idx += 1
    act_sc = refs[idx]; idx += 1
    gx_sc = refs[idx]; idx += 1

    # Packed-gate activation constants, hoisted ONCE (iota/broadcast is not
    # CSE'd by JAX, so never build these inside the loops).
    # Gate slots along lanes: [i | f | g | o], each H wide.  The sigmoid gates
    # (i, f, o) already had their pre-activation scaled by 0.5 via the folded
    # weights, so:  sigmoid(x) = 0.5*tanh(x/2) + 0.5  and  tanh for the g slot
    # come out of ONE packed tanh pass followed by a masked affine transform.
    lane = lax.broadcasted_iota(jnp.int32, (1, G), 1)
    is_g = jnp.logical_and(lane >= 2 * H, lane < 3 * H)
    post_mul = jnp.where(is_g, 1.0, 0.5).astype(jnp.float32)
    post_add = jnp.where(is_g, 0.0, 0.5).astype(jnp.float32)

    def project(acts_2d, layer):
        # One large MXU matmul per layer (bf16 x bf16 -> f32 accumulate),
        # bias folded in; runs once per layer, off the per-step serial chain,
        # and its 4H-wide result never leaves VMEM.
        gx = (jnp.dot(acts_2d.astype(jnp.bfloat16), wih_refs[layer][...],
                      preferred_element_type=jnp.float32)
              + b_refs[layer][...])
        gx_sc[...] = gx.reshape(seq_len, b_pad, G)

    def run_layer(layer, write_act):
        whh_ref = whh_refs[layer]

        def step(t, carry):
            h_prev, c_prev = carry
            # Serial critical path: a single small bf16 MXU matmul per step
            # (N = 4H packed columns, f32 accumulation).
            z = gx_sc[t] + jnp.dot(h_prev.astype(jnp.bfloat16), whh_ref[...],
                                   preferred_element_type=jnp.float32)
            # One EUP tanh pass over the packed (i,f,g,o) gates.
            a = jnp.tanh(z) * post_mul + post_add
            i_g = a[:, 0 * H:1 * H]
            f_g = a[:, 1 * H:2 * H]
            g_g = a[:, 2 * H:3 * H]
            o_g = a[:, 3 * H:4 * H]
            c_new = f_g * c_prev + i_g * g_g
            h_new = o_g * jnp.tanh(c_new)
            if write_act:
                act_sc[t] = h_new     # lane-dense VMEM buffer, no HBM store
            return (h_new, c_new)

        zeros = jnp.zeros((b_pad, H), jnp.float32)
        h_n, c_n = lax.fori_loop(0, seq_len, step, (zeros, zeros),
                                 unroll=unroll)
        # Final (hidden, cell) written once per layer.
        hidden_ref[layer] = h_n
        cell_ref[layer] = c_n

    # Layer 0: project straight from the narrow embedded input in-kernel.
    project(emb_ref[...].reshape(seq_len * b_pad, emb_dim), 0)
    run_layer(0, write_act=num_layers > 1)

    # Layers 1..L-1: per-layer input projection from the VMEM-resident
    # activations, then the recurrence.  Activations never touch HBM.
    for layer in range(1, num_layers):
        project(act_sc[...].reshape(seq_len * b_pad, H), layer)
        run_layer(layer, write_act=layer < num_layers - 1)


def init_encoder_params(key, input_size, embedding_size, hidden_size,
                        num_layers):
    """Raw PyTorch-layout parameters (nn.Embedding + nn.LSTM shapes)."""
    keys = jax.random.split(key, 1 + 4 * num_layers)
    params = {
        "embedding": jax.random.normal(
            keys[0], (input_size, embedding_size), dtype=jnp.float32),
        "layers": [],
    }
    bound = 1.0 / float(hidden_size) ** 0.5
    for layer in range(num_layers):
        in_dim = embedding_size if layer == 0 else hidden_size
        kw = keys[1 + 4 * layer: 1 + 4 * (layer + 1)]
        w_ih = jax.random.uniform(kw[0], (4 * hidden_size, in_dim),
                                  minval=-bound, maxval=bound,
                                  dtype=jnp.float32)
        w_hh = jax.random.uniform(kw[1], (4 * hidden_size, hidden_size),
                                  minval=-bound, maxval=bound,
                                  dtype=jnp.float32)
        b_ih = jax.random.uniform(kw[2], (4 * hidden_size,),
                                  minval=-bound, maxval=bound,
                                  dtype=jnp.float32)
        b_hh = jax.random.uniform(kw[3], (4 * hidden_size,),
                                  minval=-bound, maxval=bound,
                                  dtype=jnp.float32)
        params["layers"].append((w_ih, w_hh, b_ih, b_hh))
    return params


def prepare_encoder_params(raw, hidden_size, num_layers):
    """One-time conversion: transpose weights, fold b_ih+b_hh, fold the 0.5
    sigmoid pre-scale into the i/f/o gate columns (exact power-of-two scale),
    and cast the matmul weights to bf16 (MXU-native, f32 accumulation in the
    kernel).  Gates stay PACKED at width 4*H (no per-gate lane padding)."""
    H = hidden_size
    G = 4 * H
    gate_scale = jnp.concatenate([
        jnp.full((H,), 0.5, jnp.float32),   # i
        jnp.full((H,), 0.5, jnp.float32),   # f
        jnp.full((H,), 1.0, jnp.float32),   # g (tanh, no pre-scale)
        jnp.full((H,), 0.5, jnp.float32),   # o
    ])

    wihT, whhT, bias = [], [], []
    for (w_ih, w_hh, b_ih, b_hh) in raw["layers"]:
        wihT.append((jnp.transpose(w_ih) * gate_scale[None, :])
                    .astype(jnp.bfloat16))                      # (in_dim, G)
        whhT.append((jnp.transpose(w_hh) * gate_scale[None, :])
                    .astype(jnp.bfloat16))                      # (H, G)
        bias.append(((b_ih + b_hh) * gate_scale)
                    .reshape(1, G).astype(jnp.float32))         # (1, G)

    return {
        "embedding": raw["embedding"],
        "embedding_dim": raw["embedding"].shape[1],
        "hidden_size": H,
        "num_layers": num_layers,
        "wihT": wihT,
        "whhT": whhT,
        "bias": bias,
    }


def encoder_forward(params, x_tokens):
    """x_tokens: (seq_len, batch) int32.  Returns (hidden, cell), each
    (num_layers, batch, hidden_size) — matching PyTorch Encoder.forward."""
    S, B = x_tokens.shape
    H = params["hidden_size"]
    E = params["embedding_dim"]
    L = params["num_layers"]
    B_pad = _round_up(B, SUBLANE)
    G = 4 * H

    # Embedding gather: plain-JAX glue (data-dependent gather).
    emb = jnp.take(params["embedding"], x_tokens, axis=0)          # (S, B, E)
    # TODO(synk): nn.Dropout(p) (input + inter-layer LSTM dropout) is treated
    # as identity (eval mode); stochastic training dropout has no
    # deterministic reference here.

    # Pad batch to a sublane multiple.  Padded batch rows see only the bias
    # (nonzero), so their hidden/cell values are junk — rows are independent
    # and the padding is stripped below.
    emb_p = jnp.pad(emb, ((0, 0), (0, B_pad - B), (0, 0)))

    inputs = ([emb_p] + list(params["wihT"]) + list(params["whhT"])
              + list(params["bias"]))

    kernel = functools.partial(
        _fused_lstm_kernel, num_layers=L, seq_len=S, b_pad=B_pad,
        hidden=H, emb_dim=E, unroll=min(S, 8))

    # Explicit VMEM budget sized from the actual resident footprint
    # (weights + emb + scratch + outputs), with headroom, capped to stay
    # inside every generation's physical VMEM.
    footprint = sum(int(a.size) * a.dtype.itemsize for a in inputs)
    footprint += 2 * L * B_pad * H * 4          # hidden, cell outputs
    footprint += S * B_pad * H * 4              # inter-layer act scratch
    footprint += S * B_pad * G * 4              # per-layer gates_x scratch
    vmem_limit = int(min(64 << 20, max(16 << 20, 2 * footprint + (4 << 20))))

    vmem = lambda: pl.BlockSpec(memory_space=pltpu.MemorySpace.VMEM)
    hidden_p, cell_p = pl.pallas_call(
        kernel,
        out_shape=(
            jax.ShapeDtypeStruct((L, B_pad, H), jnp.float32),
            jax.ShapeDtypeStruct((L, B_pad, H), jnp.float32),
        ),
        in_specs=[vmem() for _ in inputs],
        out_specs=(vmem(), vmem()),
        scratch_shapes=[
            pltpu.VMEM((S, B_pad, H), jnp.float32),   # inter-layer acts
            pltpu.VMEM((S, B_pad, G), jnp.float32),   # per-layer gates_x
        ],
        compiler_params=pltpu.CompilerParams(vmem_limit_bytes=vmem_limit),
    )(*inputs)

    # Strip batch padding.
    return hidden_p[:, :B, :], cell_p[:, :B, :]


def encoder_forward_ref(raw, x_tokens):
    """Pure-JAX (XLA, f32 HIGHEST) reference with PyTorch nn.LSTM semantics."""
    emb = jnp.take(raw["embedding"], x_tokens, axis=0)
    layer_in = emb
    hs, cs = [], []
    for (w_ih, w_hh, b_ih, b_hh) in raw["layers"]:
        B = layer_in.shape[1]
        H = w_hh.shape[1]

        def step(carry, x_t, w_ih=w_ih, w_hh=w_hh, b=b_ih + b_hh):
            h, c = carry
            gates = (jnp.dot(x_t, w_ih.T, precision=lax.Precision.HIGHEST)
                     + jnp.dot(h, w_hh.T, precision=lax.Precision.HIGHEST)
                     + b)
            i, f, g, o = jnp.split(gates, 4, axis=-1)
            c = jax.nn.sigmoid(f) * c + jax.nn.sigmoid(i) * jnp.tanh(g)
            h = jax.nn.sigmoid(o) * jnp.tanh(c)
            return (h, c), h

        init = (jnp.zeros((B, H), jnp.float32),
                jnp.zeros((B, H), jnp.float32))
        (h_n, c_n), outs = lax.scan(step, init, layer_in)
        hs.append(h_n)
        cs.append(c_n)
        layer_in = outs
    return jnp.stack(hs, axis=0), jnp.stack(cs, axis=0)


if __name__ == "__main__":
    INPUT_SIZE = 50        # vocab size
    EMBEDDING_SIZE = 16
    HIDDEN_SIZE = 32
    NUM_LAYERS = 2
    SEQ_LEN = 8
    BATCH = 2

    root = jax.random.PRNGKey(0)
    k_tok, k_par = jax.random.split(root)

    x = jax.random.randint(k_tok, (SEQ_LEN, BATCH), 0, INPUT_SIZE,
                           dtype=jnp.int32)
    raw = init_encoder_params(k_par, INPUT_SIZE, EMBEDDING_SIZE,
                              HIDDEN_SIZE, NUM_LAYERS)
    params = prepare_encoder_params(raw, HIDDEN_SIZE, NUM_LAYERS)

    hidden, cell = encoder_forward(params, x)
    hidden = jax.block_until_ready(hidden)
    cell = jax.block_until_ready(cell)

    assert hidden.shape == (NUM_LAYERS, BATCH, HIDDEN_SIZE)
    assert cell.shape == (NUM_LAYERS, BATCH, HIDDEN_SIZE)

    # Correctness check against the pure-JAX f32 reference.  Tolerance covers
    # bf16 MXU operands (f32 accumulation) vs the XLA HIGHEST f32 reference.
    hidden_ref, cell_ref = encoder_forward_ref(raw, x)
    assert jnp.allclose(hidden, hidden_ref, atol=2e-2, rtol=2e-2), \
        float(jnp.max(jnp.abs(hidden - hidden_ref)))
    assert jnp.allclose(cell, cell_ref, atol=2e-2, rtol=2e-2), \
        float(jnp.max(jnp.abs(cell - cell_ref)))

    print("KERNEL_OK")
</pallas_src>

<mosaic_0001>
module attributes {stable_mosaic.version = 11 : i64} {
  func.func @_fused_lstm_kernel(%arg0: memref<8x8x16xf32, #tpu.memory_space<vmem>>, %arg1: memref<16x128xbf16, #tpu.memory_space<vmem>>, %arg2: memref<32x128xbf16, #tpu.memory_space<vmem>>, %arg3: memref<32x128xbf16, #tpu.memory_space<vmem>>, %arg4: memref<32x128xbf16, #tpu.memory_space<vmem>>, %arg5: memref<1x128xf32, #tpu.memory_space<vmem>>, %arg6: memref<1x128xf32, #tpu.memory_space<vmem>>, %arg7: memref<2x8x32xf32, #tpu.memory_space<vmem>>, %arg8: memref<2x8x32xf32, #tpu.memory_space<vmem>>, %arg9: memref<8x8x32xf32, #tpu.memory_space<vmem>>, %arg10: memref<8x8x128xf32, #tpu.memory_space<vmem>>) attributes {dimension_semantics = [], scalar_prefetch = 0 : i64, scratch_operands = 2 : i64, tpu.core_type = #tpu.core_type<tc>} {
    %0 = tpu.iota {dimensions = array<i32: 1>} : vector<1x128xi32>
    %c64_i32 = arith.constant 64 : i32
    %1 = vector.broadcast %c64_i32 : i32 to vector<1x128xi32>
    %2 = arith.cmpi sge, %0, %1 : vector<1x128xi32>
    %c96_i32 = arith.constant 96 : i32
    %3 = vector.broadcast %c96_i32 : i32 to vector<1x128xi32>
    %4 = arith.cmpi slt, %0, %3 : vector<1x128xi32>
    %5 = arith.andi %2, %4 : vector<1x128xi1>
    %cst = arith.constant 1.000000e+00 : f32
    %cst_0 = arith.constant 5.000000e-01 : f32
    %6 = vector.broadcast %cst : f32 to vector<1x128xf32>
    %7 = vector.broadcast %cst_0 : f32 to vector<1x128xf32>
    %8 = arith.select %5, %6, %7 : vector<1x128xi1>, vector<1x128xf32>
    %cst_1 = arith.constant 0.000000e+00 : f32
    %cst_2 = arith.constant 5.000000e-01 : f32
    %9 = vector.broadcast %cst_1 : f32 to vector<1x128xf32>
    %10 = vector.broadcast %cst_2 : f32 to vector<1x128xf32>
    %11 = arith.select %5, %9, %10 : vector<1x128xi1>, vector<1x128xf32>
    %c0 = arith.constant 0 : index
    %c0_3 = arith.constant 0 : index
    %c0_4 = arith.constant 0 : index
    %12 = vector.load %arg0[%c0, %c0_3, %c0_4] : memref<8x8x16xf32, #tpu.memory_space<vmem>>, vector<8x8x16xf32>
    %13 = vector.shape_cast %12 : vector<8x8x16xf32> to vector<64x16xf32>
    %14 = arith.truncf %13 : vector<64x16xf32> to vector<64x16xbf16>
    %c0_5 = arith.constant 0 : index
    %c0_6 = arith.constant 0 : index
    %15 = vector.load %arg1[%c0_5, %c0_6] : memref<16x128xbf16, #tpu.memory_space<vmem>>, vector<16x128xbf16>
    %cst_7 = arith.constant dense<0.000000e+00> : vector<64x128xf32>
    %16 = tpu.matmul %14, %15, %cst_7 {dimension_numbers = #tpu.dot_dimension_numbers<[1], [0], [0], [1], [0, 0, 1, 1], [], []>} : vector<64x16xbf16>, vector<16x128xbf16>, vector<64x128xf32> -> vector<64x128xf32>
    %c0_8 = arith.constant 0 : index
    %c0_9 = arith.constant 0 : index
    %17 = vector.load %arg5[%c0_8, %c0_9] : memref<1x128xf32, #tpu.memory_space<vmem>>, vector<1x128xf32>
    %18 = vector.broadcast %17 : vector<1x128xf32> to vector<64x128xf32>
    %19 = arith.addf %16, %18 : vector<64x128xf32>
    %20 = vector.shape_cast %19 : vector<64x128xf32> to vector<8x8x128xf32>
    %c0_10 = arith.constant 0 : index
    %c0_11 = arith.constant 0 : index
    %c0_12 = arith.constant 0 : index
    %21 = vector.load %arg10[%c0_10, %c0_11, %c0_12] : memref<8x8x128xf32, #tpu.memory_space<vmem>>, vector<8x8x128xf32>
    tpu.vector_store %arg10[%c0_10, %c0_11, %c0_12], %20 {strides = array<i32>} : memref<8x8x128xf32, #tpu.memory_space<vmem>>, vector<8x8x128xf32>,
    %cst_13 = arith.constant 0.000000e+00 : f32
    %22 = vector.broadcast %cst_13 : f32 to vector<8x32xf32>
    %c0_i32 = arith.constant 0 : i32
    %23 = arith.index_cast %c0_i32 : i32 to index
    %c0_14 = arith.constant 0 : index
    %c0_15 = arith.constant 0 : index
    %24 = vector.load %arg10[%23, %c0_14, %c0_15] : memref<8x8x128xf32, #tpu.memory_space<vmem>>, vector<1x8x128xf32>
    %25 = vector.shape_cast %24 : vector<1x8x128xf32> to vector<8x128xf32>
    %26 = arith.truncf %22 : vector<8x32xf32> to vector<8x32xbf16>
    %c0_16 = arith.constant 0 : index
    %c0_17 = arith.constant 0 : index
    %27 = vector.load %arg3[%c0_16, %c0_17] : memref<32x128xbf16, #tpu.memory_space<vmem>>, vector<32x128xbf16>
    %cst_18 = arith.constant dense<0.000000e+00> : vector<8x128xf32>
    %28 = tpu.matmul %26, %27, %cst_18 {dimension_numbers = #tpu.dot_dimension_numbers<[1], [0], [0], [1], [0, 0, 1, 1], [], []>} : vector<8x32xbf16>, vector<32x128xbf16>, vector<8x128xf32> -> vector<8x128xf32>
    %29 = arith.addf %25, %28 : vector<8x128xf32>
    %30 = math.tanh %29 : vector<8x128xf32>
    %31 = vector.broadcast %8 : vector<1x128xf32> to vector<8x128xf32>
    %32 = arith.mulf %30, %31 : vector<8x128xf32>
    %33 = vector.broadcast %11 : vector<1x128xf32> to vector<8x128xf32>
    %34 = arith.addf %32, %33 : vector<8x128xf32>
    %35 = vector.extract_strided_slice %34 {offsets = [0, 0], sizes = [8, 32], strides = [1, 1]} : vector<8x128xf32> to vector<8x32xf32>
    %36 = vector.extract_strided_slice %34 {offsets = [0, 32], sizes = [8, 32], strides = [1, 1]} : vector<8x128xf32> to vector<8x32xf32>
    %37 = vector.extract_strided_slice %34 {offsets = [0, 64], sizes = [8, 32], strides = [1, 1]} : vector<8x128xf32> to vector<8x32xf32>
    %38 = vector.extract_strided_slice %34 {offsets = [0, 96], sizes = [8, 32], strides = [1, 1]} : vector<8x128xf32> to vector<8x32xf32>
    %39 = arith.mulf %36, %22 : vector<8x32xf32>
    %40 = arith.mulf %35, %37 : vector<8x32xf32>
    %41 = arith.addf %39, %40 : vector<8x32xf32>
    %42 = math.tanh %41 : vector<8x32xf32>
    %43 = arith.mulf %38, %42 : vector<8x32xf32>
    %44 = arith.index_cast %c0_i32 : i32 to index
    %c0_19 = arith.constant 0 : index
    %c0_20 = arith.constant 0 : index
    %45 = vector.load %arg9[%44, %c0_19, %c0_20] : memref<8x8x32xf32, #tpu.memory_space<vmem>>, vector<1x8x32xf32>
    %46 = vector.shape_cast %45 : vector<1x8x32xf32> to vector<8x32xf32>
    %47 = vector.shape_cast %43 : vector<8x32xf32> to vector<1x8x32xf32>
    tpu.vector_store %arg9[%44, %c0_19, %c0_20], %47 {strides = array<i32>} : memref<8x8x32xf32, #tpu.memory_space<vmem>>, vector<1x8x32xf32>,
    %c1_i32 = arith.constant 1 : i32
    %48 = arith.index_cast %c1_i32 : i32 to index
    %c0_21 = arith.constant 0 : index
    %c0_22 = arith.constant 0 : index
    %49 = vector.load %arg10[%48, %c0_21, %c0_22] : memref<8x8x128xf32, #tpu.memory_space<vmem>>, vector<1x8x128xf32>
    %50 = vector.shape_cast %49 : vector<1x8x128xf32> to vector<8x128xf32>
    %51 = arith.truncf %43 : vector<8x32xf32> to vector<8x32xbf16>
    %c0_23 = arith.constant 0 : index
    %c0_24 = arith.constant 0 : index
    %52 = vector.load %arg3[%c0_23, %c0_24] : memref<32x128xbf16, #tpu.memory_space<vmem>>, vector<32x128xbf16>
    %cst_25 = arith.constant dense<0.000000e+00> : vector<8x128xf32>
    %53 = tpu.matmul %51, %52, %cst_25 {dimension_numbers = #tpu.dot_dimension_numbers<[1], [0], [0], [1], [0, 0, 1, 1], [], []>} : vector<8x32xbf16>, vector<32x128xbf16>, vector<8x128xf32> -> vector<8x128xf32>
    %54 = arith.addf %50, %53 : vector<8x128xf32>
    %55 = math.tanh %54 : vector<8x128xf32>
    %56 = vector.broadcast %8 : vector<1x128xf32> to vector<8x128xf32>
    %57 = arith.mulf %55, %56 : vector<8x128xf32>
    %58 = vector.broadcast %11 : vector<1x128xf32> to vector<8x128xf32>
    %59 = arith.addf %57, %58 : vector<8x128xf32>
    %60 = vector.extract_strided_slice %59 {offsets = [0, 0], sizes = [8, 32], strides = [1, 1]} : vector<8x128xf32> to vector<8x32xf32>
    %61 = vector.extract_strided_slice %59 {offsets = [0, 32], sizes = [8, 32], strides = [1, 1]} : vector<8x128xf32> to vector<8x32xf32>
    %62 = vector.extract_strided_slice %59 {offsets = [0, 64], sizes = [8, 32], strides = [1, 1]} : vector<8x128xf32> to vector<8x32xf32>
    %63 = vector.extract_strided_slice %59 {offsets = [0, 96], sizes = [8, 32], strides = [1, 1]} : vector<8x128xf32> to vector<8x32xf32>
    %64 = arith.mulf %61, %41 : vector<8x32xf32>
    %65 = arith.mulf %60, %62 : vector<8x32xf32>
    %66 = arith.addf %64, %65 : vector<8x32xf32>
    %67 = math.tanh %66 : vector<8x32xf32>
    %68 = arith.mulf %63, %67 : vector<8x32xf32>
    %69 = arith.index_cast %c1_i32 : i32 to index
    %c0_26 = arith.constant 0 : index
    %c0_27 = arith.constant 0 : index
    %70 = vector.load %arg9[%69, %c0_26, %c0_27] : memref<8x8x32xf32, #tpu.memory_space<vmem>>, vector<1x8x32xf32>
    %71 = vector.shape_cast %70 : vector<1x8x32xf32> to vector<8x32xf32>
    %72 = vector.shape_cast %68 : vector<8x32xf32> to vector<1x8x32xf32>
    tpu.vector_store %arg9[%69, %c0_26, %c0_27], %72 {strides = array<i32>} : memref<8x8x32xf32, #tpu.memory_space<vmem>>, vector<1x8x32xf32>,
    %c2_i32 = arith.constant 2 : i32
    %73 = arith.index_cast %c2_i32 : i32 to index
    %c0_28 = arith.constant 0 : index
    %c0_29 = arith.constant 0 : index
    %74 = vector.load %arg10[%73, %c0_28, %c0_29] : memref<8x8x128xf32, #tpu.memory_space<vmem>>, vector<1x8x128xf32>
    %75 = vector.shape_cast %74 : vector<1x8x128xf32> to vector<8x128xf32>
    %76 = arith.truncf %68 : vector<8x32xf32> to vector<8x32xbf16>
    %c0_30 = arith.constant 0 : index
    %c0_31 = arith.constant 0 : index
    %77 = vector.load %arg3[%c0_30, %c0_31] : memref<32x128xbf16, #tpu.memory_space<vmem>>, vector<32x128xbf16>
    %cst_32 = arith.constant dense<0.000000e+00> : vector<8x128xf32>
    %78 = tpu.matmul %76, %77, %cst_32 {dimension_numbers = #tpu.dot_dimension_numbers<[1], [0], [0], [1], [0, 0, 1, 1], [], []>} : vector<8x32xbf16>, vector<32x128xbf16>, vector<8x128xf32> -> vector<8x128xf32>
    %79 = arith.addf %75, %78 : vector<8x128xf32>
    %80 = math.tanh %79 : vector<8x128xf32>
    %81 = vector.broadcast %8 : vector<1x128xf32> to vector<8x128xf32>
    %82 = arith.mulf %80, %81 : vector<8x128xf32>
    %83 = vector.broadcast %11 : vector<1x128xf32> to vector<8x128xf32>
    %84 = arith.addf %82, %83 : vector<8x128xf32>
    %85 = vector.extract_strided_slice %84 {offsets = [0, 0], sizes = [8, 32], strides = [1, 1]} : vector<8x128xf32> to vector<8x32xf32>
    %86 = vector.extract_strided_slice %84 {offsets = [0, 32], sizes = [8, 32], strides = [1, 1]} : vector<8x128xf32> to vector<8x32xf32>
    %87 = vector.extract_strided_slice %84 {offsets = [0, 64], sizes = [8, 32], strides = [1, 1]} : vector<8x128xf32> to vector<8x32xf32>
    %88 = vector.extract_strided_slice %84 {offsets = [0, 96], sizes = [8, 32], strides = [1, 1]} : vector<8x128xf32> to vector<8x32xf32>
    %89 = arith.mulf %86, %66 : vector<8x32xf32>
    %90 = arith.mulf %85, %87 : vector<8x32xf32>
    %91 = arith.addf %89, %90 : vector<8x32xf32>
    %92 = math.tanh %91 : vector<8x32xf32>
    %93 = arith.mulf %88, %92 : vector<8x32xf32>
    %94 = arith.index_cast %c2_i32 : i32 to index
    %c0_33 = arith.constant 0 : index
    %c0_34 = arith.constant 0 : index
    %95 = vector.load %arg9[%94, %c0_33, %c0_34] : memref<8x8x32xf32, #tpu.memory_space<vmem>>, vector<1x8x32xf32>
    %96 = vector.shape_cast %95 : vector<1x8x32xf32> to vector<8x32xf32>
    %97 = vector.shape_cast %93 : vector<8x32xf32> to vector<1x8x32xf32>
    tpu.vector_store %arg9[%94, %c0_33, %c0_34], %97 {strides = array<i32>} : memref<8x8x32xf32, #tpu.memory_space<vmem>>, vector<1x8x32xf32>,
    %c3_i32 = arith.constant 3 : i32
    %98 = arith.index_cast %c3_i32 : i32 to index
    %c0_35 = arith.constant 0 : index
    %c0_36 = arith.constant 0 : index
    %99 = vector.load %arg10[%98, %c0_35, %c0_36] : memref<8x8x128xf32, #tpu.memory_space<vmem>>, vector<1x8x128xf32>
    %100 = vector.shape_cast %99 : vector<1x8x128xf32> to vector<8x128xf32>
    %101 = arith.truncf %93 : vector<8x32xf32> to vector<8x32xbf16>
    %c0_37 = arith.constant 0 : index
    %c0_38 = arith.constant 0 : index
    %102 = vector.load %arg3[%c0_37, %c0_38] : memref<32x128xbf16, #tpu.memory_space<vmem>>, vector<32x128xbf16>
    %cst_39 = arith.constant dense<0.000000e+00> : vector<8x128xf32>
    %103 = tpu.matmul %101, %102, %cst_39 {dimension_numbers = #tpu.dot_dimension_numbers<[1], [0], [0], [1], [0, 0, 1, 1], [], []>} : vector<8x32xbf16>, vector<32x128xbf16>, vector<8x128xf32> -> vector<8x128xf32>
    %104 = arith.addf %100, %103 : vector<8x128xf32>
    %105 = math.tanh %104 : vector<8x128xf32>
    %106 = vector.broadcast %8 : vector<1x128xf32> to vector<8x128xf32>
    %107 = arith.mulf %105, %106 : vector<8x128xf32>
    %108 = vector.broadcast %11 : vector<1x128xf32> to vector<8x128xf32>
    %109 = arith.addf %107, %108 : vector<8x128xf32>
    %110 = vector.extract_strided_slice %109 {offsets = [0, 0], sizes = [8, 32], strides = [1, 1]} : vector<8x128xf32> to vector<8x32xf32>
    %111 = vector.extract_strided_slice %109 {offsets = [0, 32], sizes = [8, 32], strides = [1, 1]} : vector<8x128xf32> to vector<8x32xf32>
    %112 = vector.extract_strided_slice %109 {offsets = [0, 64], sizes = [8, 32], strides = [1, 1]} : vector<8x128xf32> to vector<8x32xf32>
    %113 = vector.extract_strided_slice %109 {offsets = [0, 96], sizes = [8, 32], strides = [1, 1]} : vector<8x128xf32> to vector<8x32xf32>
    %114 = arith.mulf %111, %91 : vector<8x32xf32>
    %115 = arith.mulf %110, %112 : vector<8x32xf32>
    %116 = arith.addf %114, %115 : vector<8x32xf32>
    %117 = math.tanh %116 : vector<8x32xf32>
    %118 = arith.mulf %113, %117 : vector<8x32xf32>
    %119 = arith.index_cast %c3_i32 : i32 to index
    %c0_40 = arith.constant 0 : index
    %c0_41 = arith.constant 0 : index
    %120 = vector.load %arg9[%119, %c0_40, %c0_41] : memref<8x8x32xf32, #tpu.memory_space<vmem>>, vector<1x8x32xf32>
    %121 = vector.shape_cast %120 : vector<1x8x32xf32> to vector<8x32xf32>
    %122 = vector.shape_cast %118 : vector<8x32xf32> to vector<1x8x32xf32>
    tpu.vector_store %arg9[%119, %c0_40, %c0_41], %122 {strides = array<i32>} : memref<8x8x32xf32, #tpu.memory_space<vmem>>, vector<1x8x32xf32>,
    %c4_i32 = arith.constant 4 : i32
    %123 = arith.index_cast %c4_i32 : i32 to index
    %c0_42 = arith.constant 0 : index
    %c0_43 = arith.constant 0 : index
    %124 = vector.load %arg10[%123, %c0_42, %c0_43] : memref<8x8x128xf32, #tpu.memory_space<vmem>>, vector<1x8x128xf32>
    %125 = vector.shape_cast %124 : vector<1x8x128xf32> to vector<8x128xf32>
    %126 = arith.truncf %118 : vector<8x32xf32> to vector<8x32xbf16>
    %c0_44 = arith.constant 0 : index
    %c0_45 = arith.constant 0 : index
    %127 = vector.load %arg3[%c0_44, %c0_45] : memref<32x128xbf16, #tpu.memory_space<vmem>>, vector<32x128xbf16>
    %cst_46 = arith.constant dense<0.000000e+00> : vector<8x128xf32>
    %128 = tpu.matmul %126, %127, %cst_46 {dimension_numbers = #tpu.dot_dimension_numbers<[1], [0], [0], [1], [0, 0, 1, 1], [], []>} : vector<8x32xbf16>, vector<32x128xbf16>, vector<8x128xf32> -> vector<8x128xf32>
    %129 = arith.addf %125, %128 : vector<8x128xf32>
    %130 = math.tanh %129 : vector<8x128xf32>
    %131 = vector.broadcast %8 : vector<1x128xf32> to vector<8x128xf32>
    %132 = arith.mulf %130, %131 : vector<8x128xf32>
    %133 = vector.broadcast %11 : vector<1x128xf32> to vector<8x128xf32>
    %134 = arith.addf %132, %133 : vector<8x128xf32>
    %135 = vector.extract_strided_slice %134 {offsets = [0, 0], sizes = [8, 32], strides = [1, 1]} : vector<8x128xf32> to vector<8x32xf32>
    %136 = vector.extract_strided_slice %134 {offsets = [0, 32], sizes = [8, 32], strides = [1, 1]} : vector<8x128xf32> to vector<8x32xf32>
    %137 = vector.extract_strided_slice %134 {offsets = [0, 64], sizes = [8, 32], strides = [1, 1]} : vector<8x128xf32> to vector<8x32xf32>
    %138 = vector.extract_strided_slice %134 {offsets = [0, 96], sizes = [8, 32], strides = [1, 1]} : vector<8x128xf32> to vector<8x32xf32>
    %139 = arith.mulf %136, %116 : vector<8x32xf32>
    %140 = arith.mulf %135, %137 : vector<8x32xf32>
    %141 = arith.addf %139, %140 : vector<8x32xf32>
    %142 = math.tanh %141 : vector<8x32xf32>
    %143 = arith.mulf %138, %142 : vector<8x32xf32>
    %144 = arith.index_cast %c4_i32 : i32 to index
    %c0_47 = arith.constant 0 : index
    %c0_48 = arith.constant 0 : index
    %145 = vector.load %arg9[%144, %c0_47, %c0_48] : memref<8x8x32xf32, #tpu.memory_space<vmem>>, vector<1x8x32xf32>
    %146 = vector.shape_cast %145 : vector<1x8x32xf32> to vector<8x32xf32>
    %147 = vector.shape_cast %143 : vector<8x32xf32> to vector<1x8x32xf32>
    tpu.vector_store %arg9[%144, %c0_47, %c0_48], %147 {strides = array<i32>} : memref<8x8x32xf32, #tpu.memory_space<vmem>>, vector<1x8x32xf32>,
    %c5_i32 = arith.constant 5 : i32
    %148 = arith.index_cast %c5_i32 : i32 to index
    %c0_49 = arith.constant 0 : index
    %c0_50 = arith.constant 0 : index
    %149 = vector.load %arg10[%148, %c0_49, %c0_50] : memref<8x8x128xf32, #tpu.memory_space<vmem>>, vector<1x8x128xf32>
    %150 = vector.shape_cast %149 : vector<1x8x128xf32> to vector<8x128xf32>
    %151 = arith.truncf %143 : vector<8x32xf32> to vector<8x32xbf16>
    %c0_51 = arith.constant 0 : index
    %c0_52 = arith.constant 0 : index
    %152 = vector.load %arg3[%c0_51, %c0_52] : memref<32x128xbf16, #tpu.memory_space<vmem>>, vector<32x128xbf16>
    %cst_53 = arith.constant dense<0.000000e+00> : vector<8x128xf32>
    %153 = tpu.matmul %151, %152, %cst_53 {dimension_numbers = #tpu.dot_dimension_numbers<[1], [0], [0], [1], [0, 0, 1, 1], [], []>} : vector<8x32xbf16>, vector<32x128xbf16>, vector<8x128xf32> -> vector<8x128xf32>
    %154 = arith.addf %150, %153 : vector<8x128xf32>
    %155 = math.tanh %154 : vector<8x128xf32>
    %156 = vector.broadcast %8 : vector<1x128xf32> to vector<8x128xf32>
    %157 = arith.mulf %155, %156 : vector<8x128xf32>
    %158 = vector.broadcast %11 : vector<1x128xf32> to vector<8x128xf32>
    %159 = arith.addf %157, %158 : vector<8x128xf32>
    %160 = vector.extract_strided_slice %159 {offsets = [0, 0], sizes = [8, 32], strides = [1, 1]} : vector<8x128xf32> to vector<8x32xf32>
    %161 = vector.extract_strided_slice %159 {offsets = [0, 32], sizes = [8, 32], strides = [1, 1]} : vector<8x128xf32> to vector<8x32xf32>
    %162 = vector.extract_strided_slice %159 {offsets = [0, 64], sizes = [8, 32], strides = [1, 1]} : vector<8x128xf32> to vector<8x32xf32>
    %163 = vector.extract_strided_slice %159 {offsets = [0, 96], sizes = [8, 32], strides = [1, 1]} : vector<8x128xf32> to vector<8x32xf32>
    %164 = arith.mulf %161, %141 : vector<8x32xf32>
    %165 = arith.mulf %160, %162 : vector<8x32xf32>
    %166 = arith.addf %164, %165 : vector<8x32xf32>
    %167 = math.tanh %166 : vector<8x32xf32>
    %168 = arith.mulf %163, %167 : vector<8x32xf32>
    %169 = arith.index_cast %c5_i32 : i32 to index
    %c0_54 = arith.constant 0 : index
    %c0_55 = arith.constant 0 : index
    %170 = vector.load %arg9[%169, %c0_54, %c0_55] : memref<8x8x32xf32, #tpu.memory_space<vmem>>, vector<1x8x32xf32>
    %171 = vector.shape_cast %170 : vector<1x8x32xf32> to vector<8x32xf32>
    %172 = vector.shape_cast %168 : vector<8x32xf32> to vector<1x8x32xf32>
    tpu.vector_store %arg9[%169, %c0_54, %c0_55], %172 {strides = array<i32>} : memref<8x8x32xf32, #tpu.memory_space<vmem>>, vector<1x8x32xf32>,
    %c6_i32 = arith.constant 6 : i32
    %173 = arith.index_cast %c6_i32 : i32 to index
    %c0_56 = arith.constant 0 : index
    %c0_57 = arith.constant 0 : index
    %174 = vector.load %arg10[%173, %c0_56, %c0_57] : memref<8x8x128xf32, #tpu.memory_space<vmem>>, vector<1x8x128xf32>
    %175 = vector.shape_cast %174 : vector<1x8x128xf32> to vector<8x128xf32>
    %176 = arith.truncf %168 : vector<8x32xf32> to vector<8x32xbf16>
    %c0_58 = arith.constant 0 : index
    %c0_59 = arith.constant 0 : index
    %177 = vector.load %arg3[%c0_58, %c0_59] : memref<32x128xbf16, #tpu.memory_space<vmem>>, vector<32x128xbf16>
    %cst_60 = arith.constant dense<0.000000e+00> : vector<8x128xf32>
    %178 = tpu.matmul %176, %177, %cst_60 {dimension_numbers = #tpu.dot_dimension_numbers<[1], [0], [0], [1], [0, 0, 1, 1], [], []>} : vector<8x32xbf16>, vector<32x128xbf16>, vector<8x128xf32> -> vector<8x128xf32>
    %179 = arith.addf %175, %178 : vector<8x128xf32>
    %180 = math.tanh %179 : vector<8x128xf32>
    %181 = vector.broadcast %8 : vector<1x128xf32> to vector<8x128xf32>
    %182 = arith.mulf %180, %181 : vector<8x128xf32>
    %183 = vector.broadcast %11 : vector<1x128xf32> to vector<8x128xf32>
    %184 = arith.addf %182, %183 : vector<8x128xf32>
    %185 = vector.extract_strided_slice %184 {offsets = [0, 0], sizes = [8, 32], strides = [1, 1]} : vector<8x128xf32> to vector<8x32xf32>
    %186 = vector.extract_strided_slice %184 {offsets = [0, 32], sizes = [8, 32], strides = [1, 1]} : vector<8x128xf32> to vector<8x32xf32>
    %187 = vector.extract_strided_slice %184 {offsets = [0, 64], sizes = [8, 32], strides = [1, 1]} : vector<8x128xf32> to vector<8x32xf32>
    %188 = vector.extract_strided_slice %184 {offsets = [0, 96], sizes = [8, 32], strides = [1, 1]} : vector<8x128xf32> to vector<8x32xf32>
    %189 = arith.mulf %186, %166 : vector<8x32xf32>
    %190 = arith.mulf %185, %187 : vector<8x32xf32>
    %191 = arith.addf %189, %190 : vector<8x32xf32>
    %192 = math.tanh %191 : vector<8x32xf32>
    %193 = arith.mulf %188, %192 : vector<8x32xf32>
    %194 = arith.index_cast %c6_i32 : i32 to index
    %c0_61 = arith.constant 0 : index
    %c0_62 = arith.constant 0 : index
    %195 = vector.load %arg9[%194, %c0_61, %c0_62] : memref<8x8x32xf32, #tpu.memory_space<vmem>>, vector<1x8x32xf32>
    %196 = vector.shape_cast %195 : vector<1x8x32xf32> to vector<8x32xf32>
    %197 = vector.shape_cast %193 : vector<8x32xf32> to vector<1x8x32xf32>
    tpu.vector_store %arg9[%194, %c0_61, %c0_62], %197 {strides = array<i32>} : memref<8x8x32xf32, #tpu.memory_space<vmem>>, vector<1x8x32xf32>,
    %c7_i32 = arith.constant 7 : i32
    %198 = arith.index_cast %c7_i32 : i32 to index
    %c0_63 = arith.constant 0 : index
    %c0_64 = arith.constant 0 : index
    %199 = vector.load %arg10[%198, %c0_63, %c0_64] : memref<8x8x128xf32, #tpu.memory_space<vmem>>, vector<1x8x128xf32>
    %200 = vector.shape_cast %199 : vector<1x8x128xf32> to vector<8x128xf32>
    %201 = arith.truncf %193 : vector<8x32xf32> to vector<8x32xbf16>
    %c0_65 = arith.constant 0 : index
    %c0_66 = arith.constant 0 : index
    %202 = vector.load %arg3[%c0_65, %c0_66] : memref<32x128xbf16, #tpu.memory_space<vmem>>, vector<32x128xbf16>
    %cst_67 = arith.constant dense<0.000000e+00> : vector<8x128xf32>
    %203 = tpu.matmul %201, %202, %cst_67 {dimension_numbers = #tpu.dot_dimension_numbers<[1], [0], [0], [1], [0, 0, 1, 1], [], []>} : vector<8x32xbf16>, vector<32x128xbf16>, vector<8x128xf32> -> vector<8x128xf32>
    %204 = arith.addf %200, %203 : vector<8x128xf32>
    %205 = math.tanh %204 : vector<8x128xf32>
    %206 = vector.broadcast %8 : vector<1x128xf32> to vector<8x128xf32>
    %207 = arith.mulf %205, %206 : vector<8x128xf32>
    %208 = vector.broadcast %11 : vector<1x128xf32> to vector<8x128xf32>
    %209 = arith.addf %207, %208 : vector<8x128xf32>
    %210 = vector.extract_strided_slice %209 {offsets = [0, 0], sizes = [8, 32], strides = [1, 1]} : vector<8x128xf32> to vector<8x32xf32>
    %211 = vector.extract_strided_slice %209 {offsets = [0, 32], sizes = [8, 32], strides = [1, 1]} : vector<8x128xf32> to vector<8x32xf32>
    %212 = vector.extract_strided_slice %209 {offsets = [0, 64], sizes = [8, 32], strides = [1, 1]} : vector<8x128xf32> to vector<8x32xf32>
    %213 = vector.extract_strided_slice %209 {offsets = [0, 96], sizes = [8, 32], strides = [1, 1]} : vector<8x128xf32> to vector<8x32xf32>
    %214 = arith.mulf %211, %191 : vector<8x32xf32>
    %215 = arith.mulf %210, %212 : vector<8x32xf32>
    %216 = arith.addf %214, %215 : vector<8x32xf32>
    %217 = math.tanh %216 : vector<8x32xf32>
    %218 = arith.mulf %213, %217 : vector<8x32xf32>
    %219 = arith.index_cast %c7_i32 : i32 to index
    %c0_68 = arith.constant 0 : index
    %c0_69 = arith.constant 0 : index
    %220 = vector.load %arg9[%219, %c0_68, %c0_69] : memref<8x8x32xf32, #tpu.memory_space<vmem>>, vector<1x8x32xf32>
    %221 = vector.shape_cast %220 : vector<1x8x32xf32> to vector<8x32xf32>
    %222 = vector.shape_cast %218 : vector<8x32xf32> to vector<1x8x32xf32>
    tpu.vector_store %arg9[%219, %c0_68, %c0_69], %222 {strides = array<i32>} : memref<8x8x32xf32, #tpu.memory_space<vmem>>, vector<1x8x32xf32>,
    %c8_i32 = arith.constant 8 : i32
    %c0_70 = arith.constant 0 : index
    %c0_71 = arith.constant 0 : index
    %c0_72 = arith.constant 0 : index
    %223 = vector.load %arg7[%c0_70, %c0_71, %c0_72] : memref<2x8x32xf32, #tpu.memory_space<vmem>>, vector<1x8x32xf32>
    %224 = vector.shape_cast %223 : vector<1x8x32xf32> to vector<8x32xf32>
    %225 = vector.shape_cast %218 : vector<8x32xf32> to vector<1x8x32xf32>
    tpu.vector_store %arg7[%c0_70, %c0_71, %c0_72], %225 {strides = array<i32>} : memref<2x8x32xf32, #tpu.memory_space<vmem>>, vector<1x8x32xf32>,
    %c0_73 = arith.constant 0 : index
    %c0_74 = arith.constant 0 : index
    %c0_75 = arith.constant 0 : index
    %226 = vector.load %arg8[%c0_73, %c0_74, %c0_75] : memref<2x8x32xf32, #tpu.memory_space<vmem>>, vector<1x8x32xf32>
    %227 = vector.shape_cast %226 : vector<1x8x32xf32> to vector<8x32xf32>
    %228 = vector.shape_cast %216 : vector<8x32xf32> to vector<1x8x32xf32>
    tpu.vector_store %arg8[%c0_73, %c0_74, %c0_75], %228 {strides = array<i32>} : memref<2x8x32xf32, #tpu.memory_space<vmem>>, vector<1x8x32xf32>,
    %c0_76 = arith.constant 0 : index
    %c0_77 = arith.constant 0 : index
    %c0_78 = arith.constant 0 : index
    %229 = vector.load %arg9[%c0_76, %c0_77, %c0_78] : memref<8x8x32xf32, #tpu.memory_space<vmem>>, vector<8x8x32xf32>
    %230 = vector.shape_cast %229 : vector<8x8x32xf32> to vector<64x32xf32>
    %231 = arith.truncf %230 : vector<64x32xf32> to vector<64x32xbf16>
    %c0_79 = arith.constant 0 : index
    %c0_80 = arith.constant 0 : index
    %232 = vector.load %arg2[%c0_79, %c0_80] : memref<32x128xbf16, #tpu.memory_space<vmem>>, vector<32x128xbf16>
    %cst_81 = arith.constant dense<0.000000e+00> : vector<64x128xf32>
    %233 = tpu.matmul %231, %232, %cst_81 {dimension_numbers = #tpu.dot_dimension_numbers<[1], [0], [0], [1], [0, 0, 1, 1], [], []>} : vector<64x32xbf16>, vector<32x128xbf16>, vector<64x128xf32> -> vector<64x128xf32>
    %c0_82 = arith.constant 0 : index
    %c0_83 = arith.constant 0 : index
    %234 = vector.load %arg6[%c0_82, %c0_83] : memref<1x128xf32, #tpu.memory_space<vmem>>, vector<1x128xf32>
    %235 = vector.broadcast %234 : vector<1x128xf32> to vector<64x128xf32>
    %236 = arith.addf %233, %235 : vector<64x128xf32>
    %237 = vector.shape_cast %236 : vector<64x128xf32> to vector<8x8x128xf32>
    %c0_84 = arith.constant 0 : index
    %c0_85 = arith.constant 0 : index
    %c0_86 = arith.constant 0 : index
    %238 = vector.load %arg10[%c0_84, %c0_85, %c0_86] : memref<8x8x128xf32, #tpu.memory_space<vmem>>, vector<8x8x128xf32>
    tpu.vector_store %arg10[%c0_84, %c0_85, %c0_86], %237 {strides = array<i32>} : memref<8x8x128xf32, #tpu.memory_space<vmem>>, vector<8x8x128xf32>,
    %cst_87 = arith.constant 0.000000e+00 : f32
    %239 = vector.broadcast %cst_87 : f32 to vector<8x32xf32>
    %c0_i32_88 = arith.constant 0 : i32
    %240 = arith.index_cast %c0_i32_88 : i32 to index
    %c0_89 = arith.constant 0 : index
    %c0_90 = arith.constant 0 : index
    %241 = vector.load %arg10[%240, %c0_89, %c0_90] : memref<8x8x128xf32, #tpu.memory_space<vmem>>, vector<1x8x128xf32>
    %242 = vector.shape_cast %241 : vector<1x8x128xf32> to vector<8x128xf32>
    %243 = arith.truncf %239 : vector<8x32xf32> to vector<8x32xbf16>
    %c0_91 = arith.constant 0 : index
    %c0_92 = arith.constant 0 : index
    %244 = vector.load %arg4[%c0_91, %c0_92] : memref<32x128xbf16, #tpu.memory_space<vmem>>, vector<32x128xbf16>
    %cst_93 = arith.constant dense<0.000000e+00> : vector<8x128xf32>
    %245 = tpu.matmul %243, %244, %cst_93 {dimension_numbers = #tpu.dot_dimension_numbers<[1], [0], [0], [1], [0, 0, 1, 1], [], []>} : vector<8x32xbf16>, vector<32x128xbf16>, vector<8x128xf32> -> vector<8x128xf32>
    %246 = arith.addf %242, %245 : vector<8x128xf32>
    %247 = math.tanh %246 : vector<8x128xf32>
    %248 = vector.broadcast %8 : vector<1x128xf32> to vector<8x128xf32>
    %249 = arith.mulf %247, %248 : vector<8x128xf32>
    %250 = vector.broadcast %11 : vector<1x128xf32> to vector<8x128xf32>
    %251 = arith.addf %249, %250 : vector<8x128xf32>
    %252 = vector.extract_strided_slice %251 {offsets = [0, 0], sizes = [8, 32], strides = [1, 1]} : vector<8x128xf32> to vector<8x32xf32>
    %253 = vector.extract_strided_slice %251 {offsets = [0, 32], sizes = [8, 32], strides = [1, 1]} : vector<8x128xf32> to vector<8x32xf32>
    %254 = vector.extract_strided_slice %251 {offsets = [0, 64], sizes = [8, 32], strides = [1, 1]} : vector<8x128xf32> to vector<8x32xf32>
    %255 = vector.extract_strided_slice %251 {offsets = [0, 96], sizes = [8, 32], strides = [1, 1]} : vector<8x128xf32> to vector<8x32xf32>
    %256 = arith.mulf %253, %239 : vector<8x32xf32>
    %257 = arith.mulf %252, %254 : vector<8x32xf32>
    %258 = arith.addf %256, %257 : vector<8x32xf32>
    %259 = math.tanh %258 : vector<8x32xf32>
    %260 = arith.mulf %255, %259 : vector<8x32xf32>
    %c1_i32_94 = arith.constant 1 : i32
    %261 = arith.index_cast %c1_i32_94 : i32 to index
    %c0_95 = arith.constant 0 : index
    %c0_96 = arith.constant 0 : index
    %262 = vector.load %arg10[%261, %c0_95, %c0_96] : memref<8x8x128xf32, #tpu.memory_space<vmem>>, vector<1x8x128xf32>
    %263 = vector.shape_cast %262 : vector<1x8x128xf32> to vector<8x128xf32>
    %264 = arith.truncf %260 : vector<8x32xf32> to vector<8x32xbf16>
    %c0_97 = arith.constant 0 : index
    %c0_98 = arith.constant 0 : index
    %265 = vector.load %arg4[%c0_97, %c0_98] : memref<32x128xbf16, #tpu.memory_space<vmem>>, vector<32x128xbf16>
    %cst_99 = arith.constant dense<0.000000e+00> : vector<8x128xf32>
    %266 = tpu.matmul %264, %265, %cst_99 {dimension_numbers = #tpu.dot_dimension_numbers<[1], [0], [0], [1], [0, 0, 1, 1], [], []>} : vector<8x32xbf16>, vector<32x128xbf16>, vector<8x128xf32> -> vector<8x128xf32>
    %267 = arith.addf %263, %266 : vector<8x128xf32>
    %268 = math.tanh %267 : vector<8x128xf32>
    %269 = vector.broadcast %8 : vector<1x128xf32> to vector<8x128xf32>
    %270 = arith.mulf %268, %269 : vector<8x128xf32>
    %271 = vector.broadcast %11 : vector<1x128xf32> to vector<8x128xf32>
    %272 = arith.addf %270, %271 : vector<8x128xf32>
    %273 = vector.extract_strided_slice %272 {offsets = [0, 0], sizes = [8, 32], strides = [1, 1]} : vector<8x128xf32> to vector<8x32xf32>
    %274 = vector.extract_strided_slice %272 {offsets = [0, 32], sizes = [8, 32], strides = [1, 1]} : vector<8x128xf32> to vector<8x32xf32>
    %275 = vector.extract_strided_slice %272 {offsets = [0, 64], sizes = [8, 32], strides = [1, 1]} : vector<8x128xf32> to vector<8x32xf32>
    %276 = vector.extract_strided_slice %272 {offsets = [0, 96], sizes = [8, 32], strides = [1, 1]} : vector<8x128xf32> to vector<8x32xf32>
    %277 = arith.mulf %274, %258 : vector<8x32xf32>
    %278 = arith.mulf %273, %275 : vector<8x32xf32>
    %279 = arith.addf %277, %278 : vector<8x32xf32>
    %280 = math.tanh %279 : vector<8x32xf32>
    %281 = arith.mulf %276, %280 : vector<8x32xf32>
    %c2_i32_100 = arith.constant 2 : i32
    %282 = arith.index_cast %c2_i32_100 : i32 to index
    %c0_101 = arith.constant 0 : index
    %c0_102 = arith.constant 0 : index
    %283 = vector.load %arg10[%282, %c0_101, %c0_102] : memref<8x8x128xf32, #tpu.memory_space<vmem>>, vector<1x8x128xf32>
    %284 = vector.shape_cast %283 : vector<1x8x128xf32> to vector<8x128xf32>
    %285 = arith.truncf %281 : vector<8x32xf32> to vector<8x32xbf16>
    %c0_103 = arith.constant 0 : index
    %c0_104 = arith.constant 0 : index
    %286 = vector.load %arg4[%c0_103, %c0_104] : memref<32x128xbf16, #tpu.memory_space<vmem>>, vector<32x128xbf16>
    %cst_105 = arith.constant dense<0.000000e+00> : vector<8x128xf32>
    %287 = tpu.matmul %285, %286, %cst_105 {dimension_numbers = #tpu.dot_dimension_numbers<[1], [0], [0], [1], [0, 0, 1, 1], [], []>} : vector<8x32xbf16>, vector<32x128xbf16>, vector<8x128xf32> -> vector<8x128xf32>
    %288 = arith.addf %284, %287 : vector<8x128xf32>
    %289 = math.tanh %288 : vector<8x128xf32>
    %290 = vector.broadcast %8 : vector<1x128xf32> to vector<8x128xf32>
    %291 = arith.mulf %289, %290 : vector<8x128xf32>
    %292 = vector.broadcast %11 : vector<1x128xf32> to vector<8x128xf32>
    %293 = arith.addf %291, %292 : vector<8x128xf32>
    %294 = vector.extract_strided_slice %293 {offsets = [0, 0], sizes = [8, 32], strides = [1, 1]} : vector<8x128xf32> to vector<8x32xf32>
    %295 = vector.extract_strided_slice %293 {offsets = [0, 32], sizes = [8, 32], strides = [1, 1]} : vector<8x128xf32> to vector<8x32xf32>
    %296 = vector.extract_strided_slice %293 {offsets = [0, 64], sizes = [8, 32], strides = [1, 1]} : vector<8x128xf32> to vector<8x32xf32>
    %297 = vector.extract_strided_slice %293 {offsets = [0, 96], sizes = [8, 32], strides = [1, 1]} : vector<8x128xf32> to vector<8x32xf32>
    %298 = arith.mulf %295, %279 : vector<8x32xf32>
    %299 = arith.mulf %294, %296 : vector<8x32xf32>
    %300 = arith.addf %298, %299 : vector<8x32xf32>
    %301 = math.tanh %300 : vector<8x32xf32>
    %302 = arith.mulf %297, %301 : vector<8x32xf32>
    %c3_i32_106 = arith.constant 3 : i32
    %303 = arith.index_cast %c3_i32_106 : i32 to index
    %c0_107 = arith.constant 0 : index
    %c0_108 = arith.constant 0 : index
    %304 = vector.load %arg10[%303, %c0_107, %c0_108] : memref<8x8x128xf32, #tpu.memory_space<vmem>>, vector<1x8x128xf32>
    %305 = vector.shape_cast %304 : vector<1x8x128xf32> to vector<8x128xf32>
    %306 = arith.truncf %302 : vector<8x32xf32> to vector<8x32xbf16>
    %c0_109 = arith.constant 0 : index
    %c0_110 = arith.constant 0 : index
    %307 = vector.load %arg4[%c0_109, %c0_110] : memref<32x128xbf16, #tpu.memory_space<vmem>>, vector<32x128xbf16>
    %cst_111 = arith.constant dense<0.000000e+00> : vector<8x128xf32>
    %308 = tpu.matmul %306, %307, %cst_111 {dimension_numbers = #tpu.dot_dimension_numbers<[1], [0], [0], [1], [0, 0, 1, 1], [], []>} : vector<8x32xbf16>, vector<32x128xbf16>, vector<8x128xf32> -> vector<8x128xf32>
    %309 = arith.addf %305, %308 : vector<8x128xf32>
    %310 = math.tanh %309 : vector<8x128xf32>
    %311 = vector.broadcast %8 : vector<1x128xf32> to vector<8x128xf32>
    %312 = arith.mulf %310, %311 : vector<8x128xf32>
    %313 = vector.broadcast %11 : vector<1x128xf32> to vector<8x128xf32>
    %314 = arith.addf %312, %313 : vector<8x128xf32>
    %315 = vector.extract_strided_slice %314 {offsets = [0, 0], sizes = [8, 32], strides = [1, 1]} : vector<8x128xf32> to vector<8x32xf32>
    %316 = vector.extract_strided_slice %314 {offsets = [0, 32], sizes = [8, 32], strides = [1, 1]} : vector<8x128xf32> to vector<8x32xf32>
    %317 = vector.extract_strided_slice %314 {offsets = [0, 64], sizes = [8, 32], strides = [1, 1]} : vector<8x128xf32> to vector<8x32xf32>
    %318 = vector.extract_strided_slice %314 {offsets = [0, 96], sizes = [8, 32], strides = [1, 1]} : vector<8x128xf32> to vector<8x32xf32>
    %319 = arith.mulf %316, %300 : vector<8x32xf32>
    %320 = arith.mulf %315, %317 : vector<8x32xf32>
    %321 = arith.addf %319, %320 : vector<8x32xf32>
    %322 = math.tanh %321 : vector<8x32xf32>
    %323 = arith.mulf %318, %322 : vector<8x32xf32>
    %c4_i32_112 = arith.constant 4 : i32
    %324 = arith.index_cast %c4_i32_112 : i32 to index
    %c0_113 = arith.constant 0 : index
    %c0_114 = arith.constant 0 : index
    %325 = vector.load %arg10[%324, %c0_113, %c0_114] : memref<8x8x128xf32, #tpu.memory_space<vmem>>, vector<1x8x128xf32>
    %326 = vector.shape_cast %325 : vector<1x8x128xf32> to vector<8x128xf32>
    %327 = arith.truncf %323 : vector<8x32xf32> to vector<8x32xbf16>
    %c0_115 = arith.constant 0 : index
    %c0_116 = arith.constant 0 : index
    %328 = vector.load %arg4[%c0_115, %c0_116] : memref<32x128xbf16, #tpu.memory_space<vmem>>, vector<32x128xbf16>
    %cst_117 = arith.constant dense<0.000000e+00> : vector<8x128xf32>
    %329 = tpu.matmul %327, %328, %cst_117 {dimension_numbers = #tpu.dot_dimension_numbers<[1], [0], [0], [1], [0, 0, 1, 1], [], []>} : vector<8x32xbf16>, vector<32x128xbf16>, vector<8x128xf32> -> vector<8x128xf32>
    %330 = arith.addf %326, %329 : vector<8x128xf32>
    %331 = math.tanh %330 : vector<8x128xf32>
    %332 = vector.broadcast %8 : vector<1x128xf32> to vector<8x128xf32>
    %333 = arith.mulf %331, %332 : vector<8x128xf32>
    %334 = vector.broadcast %11 : vector<1x128xf32> to vector<8x128xf32>
    %335 = arith.addf %333, %334 : vector<8x128xf32>
    %336 = vector.extract_strided_slice %335 {offsets = [0, 0], sizes = [8, 32], strides = [1, 1]} : vector<8x128xf32> to vector<8x32xf32>
    %337 = vector.extract_strided_slice %335 {offsets = [0, 32], sizes = [8, 32], strides = [1, 1]} : vector<8x128xf32> to vector<8x32xf32>
    %338 = vector.extract_strided_slice %335 {offsets = [0, 64], sizes = [8, 32], strides = [1, 1]} : vector<8x128xf32> to vector<8x32xf32>
    %339 = vector.extract_strided_slice %335 {offsets = [0, 96], sizes = [8, 32], strides = [1, 1]} : vector<8x128xf32> to vector<8x32xf32>
    %340 = arith.mulf %337, %321 : vector<8x32xf32>
    %341 = arith.mulf %336, %338 : vector<8x32xf32>
    %342 = arith.addf %340, %341 : vector<8x32xf32>
    %343 = math.tanh %342 : vector<8x32xf32>
    %344 = arith.mulf %339, %343 : vector<8x32xf32>
    %c5_i32_118 = arith.constant 5 : i32
    %345 = arith.index_cast %c5_i32_118 : i32 to index
    %c0_119 = arith.constant 0 : index
    %c0_120 = arith.constant 0 : index
    %346 = vector.load %arg10[%345, %c0_119, %c0_120] : memref<8x8x128xf32, #tpu.memory_space<vmem>>, vector<1x8x128xf32>
    %347 = vector.shape_cast %346 : vector<1x8x128xf32> to vector<8x128xf32>
    %348 = arith.truncf %344 : vector<8x32xf32> to vector<8x32xbf16>
    %c0_121 = arith.constant 0 : index
    %c0_122 = arith.constant 0 : index
    %349 = vector.load %arg4[%c0_121, %c0_122] : memref<32x128xbf16, #tpu.memory_space<vmem>>, vector<32x128xbf16>
    %cst_123 = arith.constant dense<0.000000e+00> : vector<8x128xf32>
    %350 = tpu.matmul %348, %349, %cst_123 {dimension_numbers = #tpu.dot_dimension_numbers<[1], [0], [0], [1], [0, 0, 1, 1], [], []>} : vector<8x32xbf16>, vector<32x128xbf16>, vector<8x128xf32> -> vector<8x128xf32>
    %351 = arith.addf %347, %350 : vector<8x128xf32>
    %352 = math.tanh %351 : vector<8x128xf32>
    %353 = vector.broadcast %8 : vector<1x128xf32> to vector<8x128xf32>
    %354 = arith.mulf %352, %353 : vector<8x128xf32>
    %355 = vector.broadcast %11 : vector<1x128xf32> to vector<8x128xf32>
    %356 = arith.addf %354, %355 : vector<8x128xf32>
    %357 = vector.extract_strided_slice %356 {offsets = [0, 0], sizes = [8, 32], strides = [1, 1]} : vector<8x128xf32> to vector<8x32xf32>
    %358 = vector.extract_strided_slice %356 {offsets = [0, 32], sizes = [8, 32], strides = [1, 1]} : vector<8x128xf32> to vector<8x32xf32>
    %359 = vector.extract_strided_slice %356 {offsets = [0, 64], sizes = [8, 32], strides = [1, 1]} : vector<8x128xf32> to vector<8x32xf32>
    %360 = vector.extract_strided_slice %356 {offsets = [0, 96], sizes = [8, 32], strides = [1, 1]} : vector<8x128xf32> to vector<8x32xf32>
    %361 = arith.mulf %358, %342 : vector<8x32xf32>
    %362 = arith.mulf %357, %359 : vector<8x32xf32>
    %363 = arith.addf %361, %362 : vector<8x32xf32>
    %364 = math.tanh %363 : vector<8x32xf32>
    %365 = arith.mulf %360, %364 : vector<8x32xf32>
    %c6_i32_124 = arith.constant 6 : i32
    %366 = arith.index_cast %c6_i32_124 : i32 to index
    %c0_125 = arith.constant 0 : index
    %c0_126 = arith.constant 0 : index
    %367 = vector.load %arg10[%366, %c0_125, %c0_126] : memref<8x8x128xf32, #tpu.memory_space<vmem>>, vector<1x8x128xf32>
    %368 = vector.shape_cast %367 : vector<1x8x128xf32> to vector<8x128xf32>
    %369 = arith.truncf %365 : vector<8x32xf32> to vector<8x32xbf16>
    %c0_127 = arith.constant 0 : index
    %c0_128 = arith.constant 0 : index
    %370 = vector.load %arg4[%c0_127, %c0_128] : memref<32x128xbf16, #tpu.memory_space<vmem>>, vector<32x128xbf16>
    %cst_129 = arith.constant dense<0.000000e+00> : vector<8x128xf32>
    %371 = tpu.matmul %369, %370, %cst_129 {dimension_numbers = #tpu.dot_dimension_numbers<[1], [0], [0], [1], [0, 0, 1, 1], [], []>} : vector<8x32xbf16>, vector<32x128xbf16>, vector<8x128xf32> -> vector<8x128xf32>
    %372 = arith.addf %368, %371 : vector<8x128xf32>
    %373 = math.tanh %372 : vector<8x128xf32>
    %374 = vector.broadcast %8 : vector<1x128xf32> to vector<8x128xf32>
    %375 = arith.mulf %373, %374 : vector<8x128xf32>
    %376 = vector.broadcast %11 : vector<1x128xf32> to vector<8x128xf32>
    %377 = arith.addf %375, %376 : vector<8x128xf32>
    %378 = vector.extract_strided_slice %377 {offsets = [0, 0], sizes = [8, 32], strides = [1, 1]} : vector<8x128xf32> to vector<8x32xf32>
    %379 = vector.extract_strided_slice %377 {offsets = [0, 32], sizes = [8, 32], strides = [1, 1]} : vector<8x128xf32> to vector<8x32xf32>
    %380 = vector.extract_strided_slice %377 {offsets = [0, 64], sizes = [8, 32], strides = [1, 1]} : vector<8x128xf32> to vector<8x32xf32>
    %381 = vector.extract_strided_slice %377 {offsets = [0, 96], sizes = [8, 32], strides = [1, 1]} : vector<8x128xf32> to vector<8x32xf32>
    %382 = arith.mulf %379, %363 : vector<8x32xf32>
    %383 = arith.mulf %378, %380 : vector<8x32xf32>
    %384 = arith.addf %382, %383 : vector<8x32xf32>
    %385 = math.tanh %384 : vector<8x32xf32>
    %386 = arith.mulf %381, %385 : vector<8x32xf32>
    %c7_i32_130 = arith.constant 7 : i32
    %387 = arith.index_cast %c7_i32_130 : i32 to index
    %c0_131 = arith.constant 0 : index
    %c0_132 = arith.constant 0 : index
    %388 = vector.load %arg10[%387, %c0_131, %c0_132] : memref<8x8x128xf32, #tpu.memory_space<vmem>>, vector<1x8x128xf32>
    %389 = vector.shape_cast %388 : vector<1x8x128xf32> to vector<8x128xf32>
    %390 = arith.truncf %386 : vector<8x32xf32> to vector<8x32xbf16>
    %c0_133 = arith.constant 0 : index
    %c0_134 = arith.constant 0 : index
    %391 = vector.load %arg4[%c0_133, %c0_134] : memref<32x128xbf16, #tpu.memory_space<vmem>>, vector<32x128xbf16>
    %cst_135 = arith.constant dense<0.000000e+00> : vector<8x128xf32>
    %392 = tpu.matmul %390, %391, %cst_135 {dimension_numbers = #tpu.dot_dimension_numbers<[1], [0], [0], [1], [0, 0, 1, 1], [], []>} : vector<8x32xbf16>, vector<32x128xbf16>, vector<8x128xf32> -> vector<8x128xf32>
    %393 = arith.addf %389, %392 : vector<8x128xf32>
    %394 = math.tanh %393 : vector<8x128xf32>
    %395 = vector.broadcast %8 : vector<1x128xf32> to vector<8x128xf32>
    %396 = arith.mulf %394, %395 : vector<8x128xf32>
    %397 = vector.broadcast %11 : vector<1x128xf32> to vector<8x128xf32>
    %398 = arith.addf %396, %397 : vector<8x128xf32>
    %399 = vector.extract_strided_slice %398 {offsets = [0, 0], sizes = [8, 32], strides = [1, 1]} : vector<8x128xf32> to vector<8x32xf32>
    %400 = vector.extract_strided_slice %398 {offsets = [0, 32], sizes = [8, 32], strides = [1, 1]} : vector<8x128xf32> to vector<8x32xf32>
    %401 = vector.extract_strided_slice %398 {offsets = [0, 64], sizes = [8, 32], strides = [1, 1]} : vector<8x128xf32> to vector<8x32xf32>
    %402 = vector.extract_strided_slice %398 {offsets = [0, 96], sizes = [8, 32], strides = [1, 1]} : vector<8x128xf32> to vector<8x32xf32>
    %403 = arith.mulf %400, %384 : vector<8x32xf32>
    %404 = arith.mulf %399, %401 : vector<8x32xf32>
    %405 = arith.addf %403, %404 : vector<8x32xf32>
    %406 = math.tanh %405 : vector<8x32xf32>
    %407 = arith.mulf %402, %406 : vector<8x32xf32>
    %c8_i32_136 = arith.constant 8 : i32
    %c1 = arith.constant 1 : index
    %c0_137 = arith.constant 0 : index
    %c0_138 = arith.constant 0 : index
    %408 = vector.load %arg7[%c1, %c0_137, %c0_138] : memref<2x8x32xf32, #tpu.memory_space<vmem>>, vector<1x8x32xf32>
    %409 = vector.shape_cast %408 : vector<1x8x32xf32> to vector<8x32xf32>
    %410 = vector.shape_cast %407 : vector<8x32xf32> to vector<1x8x32xf32>
    tpu.vector_store %arg7[%c1, %c0_137, %c0_138], %410 {strides = array<i32>} : memref<2x8x32xf32, #tpu.memory_space<vmem>>, vector<1x8x32xf32>,
    %c1_139 = arith.constant 1 : index
    %c0_140 = arith.constant 0 : index
    %c0_141 = arith.constant 0 : index
    %411 = vector.load %arg8[%c1_139, %c0_140, %c0_141] : memref<2x8x32xf32, #tpu.memory_space<vmem>>, vector<1x8x32xf32>
    %412 = vector.shape_cast %411 : vector<1x8x32xf32> to vector<8x32xf32>
    %413 = vector.shape_cast %405 : vector<8x32xf32> to vector<1x8x32xf32>
    tpu.vector_store %arg8[%c1_139, %c0_140, %c0_141], %413 {strides = array<i32>} : memref<2x8x32xf32, #tpu.memory_space<vmem>>, vector<1x8x32xf32>,
    return
  }
}

</mosaic_0001>

<bundles_post_ra>
// kernel: tpu_custom_call.1
= control target key start
LH: loop header
LB: loop body
LE: loop exit
PB: predicated region body
PF: predicated region fallthrough
CT: control target
= control target key end

     0   :  { %14 = vsyncpa [#allocation5], 0  ;;  %s2703_s0 = inlined_call_operand.hbm [shape: f32[8,8,16], index: 0, kind: input, shape index: {}]   ;;  %s2704_s1 = inlined_call_operand.hbm [shape: bf16[16,128], index: 1, kind: input, shape index: {}]   ;;  %s2705_s2 = inlined_call_operand.hbm [shape: bf16[32,128], index: 2, kind: input, shape index: {}]   ;;  %s2706_s3 = inlined_call_operand.hbm [shape: bf16[32,128], index: 3, kind: input, shape index: {}]   ;;  %s2707_s4 = inlined_call_operand.hbm [shape: bf16[32,128], index: 4, kind: input, shape index: {}]   ;;  %s2708_s5 = inlined_call_operand.vmem [shape: f32[1,128], index: 5, kind: input, shape index: {}]   ;;  %s2709_s6 = inlined_call_operand.vmem [shape: f32[1,128], index: 6, kind: input, shape index: {}]   ;;  %s2710_s7 = inlined_call_operand.hbm [shape: f32[2,8,32], index: 7, kind: output, shape index: {0}]   ;;  %s2711_s8 = inlined_call_operand.hbm [shape: f32[2,8,32], index: 8, kind: output, shape index: {1}]  }
   0x1   :  { %15 = vsyncpa [#allocation8], 0 }
   0x2   :  { %16 = vsyncpa [#allocation11], 0 }
   0x3   :  { %17 = vsyncpa [#allocation6], 0 }
   0x4   :  { %18 = vsyncpa [#allocation15], 0  ;;  %s2204_s27 = smov [#allocation7]   ;;  %s2040_s9 = scalar_lea.hbm %s2704_s1, 128 }
   0x5   :  { %s36_s28 = sshll.u32 %s2204_s27, 4  ;;  %p2041_p0 = scmp.ne.s32.totalorder %s2704_s1, %s2040_s9  ;;  %s37_s28 = int_to_ptr.vmem [resolvable:$true] %s36_s28 }
   0x6   :  { %p2044_p1 = scmp.lt.u32.totalorder %s2040_s9, %s2704_s1 }
   0x8   :  { %p2046_p2 = pnand %p2044_p1, %p2041_p0 }
   0xa   :  { %2049 = shalt.err (!%p2046_p2)
}
   0xb   :  { %s2050_s14 = scalar_lea.vmem %s37_s28, 128  ;;  %p2055_p4 = scmp.lt.s32.totalorder %s37_s28, %s37_s28 }
   0xc   :  { %p2051_p3 = scmp.ne.s32.totalorder %s37_s28, %s2050_s14  ;;  %p2056_p5 = scmp.lt.s32.totalorder %s2050_s14, %s2050_s14 }
   0xe   :  { %p2057_p6 = por %p2056_p5, %p2055_p4 }
  0x10   :  { %p2058_p7 = pnand %p2057_p6, %p2051_p3 }
  0x12   :  { %2061 = shalt.err (!%p2058_p7)
}
  0x13   :  { %s2205_s15 = smov 64   ;;  %s2206_s16 = smov 4  }
  0x14   :  { %42 = dma.hbm_to_vmem [thread:$0]  %s2704_s1, 128, %s37_s28, [#allocation8], %s2205_s15, %s2205_s15, %s2206_s16  }
  0x15   :  { %s2207_s19 = smov [#allocation10]   ;;  %s2208_s21 = smov [#allocation4]  }
  0x16   :  { %s60_s20 = sshll.u32 %s2207_s19, 4  ;;  %s24_s22 = sshll.u32 %s2208_s21, 4  ;;  %s61_s20 = int_to_ptr.vmem [resolvable:$true] %s60_s20  ;;  %s25_s22 = int_to_ptr.vmem [resolvable:$true] %s24_s22 }
  0x17   :  { %s2062_s25 = scalar_lea.hbm %s2706_s3, 256 }
  0x18   :  { %p2063_p8 = scmp.ne.s32.totalorder %s2706_s3, %s2062_s25  ;;  %p2066_p9 = scmp.lt.u32.totalorder %s2062_s25, %s2706_s3 }
  0x1a   :  { %p2068_p10 = pnand %p2066_p9, %p2063_p8 }
  0x1c   :  { %2071 = shalt.err (!%p2068_p10)
}
  0x1d   :  { %s2072_s1 = scalar_lea.vmem %s61_s20, 256  ;;  %p2077_p12 = scmp.lt.s32.totalorder %s61_s20, %s61_s20 }
  0x1e   :  { %p2073_p11 = scmp.ne.s32.totalorder %s61_s20, %s2072_s1  ;;  %p2078_p13 = scmp.lt.s32.totalorder %s2072_s1, %s2072_s1 }
  0x20   :  { %p2079_p0 = por %p2078_p13, %p2077_p12 }
  0x22   :  { %p2080_p1 = pnand %p2079_p0, %p2073_p11 }
  0x24   :  { %2083 = shalt.err (!%p2080_p1)
}
  0x25   :  { %66 = dma.hbm_to_vmem [thread:$0]  %s2706_s3, 256, %s61_s20, [#allocation11], %s2205_s15, %s2205_s15, %s2206_s16  }
  0x26   :  { %s2084_s12 = scalar_lea.hbm %s2703_s0, 1024 }
  0x27   :  { %p2085_p2 = scmp.ne.s32.totalorder %s2703_s0, %s2084_s12  ;;  %p2088_p3 = scmp.lt.u32.totalorder %s2084_s12, %s2703_s0 }
  0x29   :  { %p2090_p4 = pnand %p2088_p3, %p2085_p2 }
  0x2b   :  { %2093 = shalt.err (!%p2090_p4)
}
  0x2c   :  { %s2094_s19 = scalar_lea.vmem %s25_s22, 1024  ;;  %p2099_p6 = scmp.lt.s32.totalorder %s25_s22, %s25_s22 }
  0x2d   :  { %p2095_p5 = scmp.ne.s32.totalorder %s25_s22, %s2094_s19  ;;  %p2100_p7 = scmp.lt.s32.totalorder %s2094_s19, %s2094_s19 }
  0x2f   :  { %p2101_p8 = por %p2100_p7, %p2099_p6 }
  0x31   :  { %p2102_p9 = pnand %p2101_p8, %p2095_p5 }
  0x33   :  { %2105 = shalt.err (!%p2102_p9)
}
  0x34   :  { %s2209_s3 = smov 128   ;;  %s2210_s20 = smov 8  }
  0x35   :  { %30 = dma.hbm_to_vmem [thread:$0]  %s2703_s0, 1024, %s25_s22, [#allocation5], %s2209_s3, %s2209_s3, %s2210_s20  }
  0x36   :  { %s2211_s24 = smov [#allocation9]   ;;  %s2212_s26 = smov [#allocation12]  }
  0x37   :  { %s48_s25 = sshll.u32 %s2211_s24, 4  ;;  %s72_s27 = sshll.u32 %s2212_s26, 4  ;;  %s49_s25 = int_to_ptr.vmem [resolvable:$true] %s48_s25  ;;  %s73_s27 = int_to_ptr.vmem [resolvable:$true] %s72_s27 }
  0x38   :  { %s2106_s1 = scalar_lea.hbm %s2705_s2, 256 }
  0x39   :  { %p2107_p10 = scmp.ne.s32.totalorder %s2705_s2, %s2106_s1  ;;  %p2110_p11 = scmp.lt.u32.totalorder %s2106_s1, %s2705_s2 }
  0x3b   :  { %p2112_p12 = pnand %p2110_p11, %p2107_p10 }
  0x3d   :  { %2115 = shalt.err (!%p2112_p12)
}
  0x3e   :  { %s2116_s0 = scalar_lea.vmem %s49_s25, 256  ;;  %p2121_p0 = scmp.lt.s32.totalorder %s49_s25, %s49_s25 }
  0x3f   :  { %p2117_p13 = scmp.ne.s32.totalorder %s49_s25, %s2116_s0  ;;  %p2122_p1 = scmp.lt.s32.totalorder %s2116_s0, %s2116_s0 }
  0x41   :  { %p2123_p2 = por %p2122_p1, %p2121_p0 }
  0x43   :  { %p2124_p3 = pnand %p2123_p2, %p2117_p13 }
  0x45   :  { %2127 = shalt.err (!%p2124_p3)
}
  0x46   :  { %54 = dma.hbm_to_vmem [thread:$0]  %s2705_s2, 256, %s49_s25, [#allocation8], %s2205_s15, %s2205_s15, %s2206_s16  }
  0x47   :  { %s2128_s17 = scalar_lea.hbm %s2707_s4, 256 }
  0x48   :  { %p2129_p4 = scmp.ne.s32.totalorder %s2707_s4, %s2128_s17  ;;  %p2132_p5 = scmp.lt.u32.totalorder %s2128_s17, %s2707_s4 }
  0x4a   :  { %p2134_p6 = pnand %p2132_p5, %p2129_p4 }
  0x4c   :  { %2137 = shalt.err (!%p2134_p6)
}
  0x4d   :  { %s2138_s24 = scalar_lea.vmem %s73_s27, 256  ;;  %p2143_p8 = scmp.lt.s32.totalorder %s73_s27, %s73_s27 }
  0x4e   :  { %p2139_p7 = scmp.ne.s32.totalorder %s73_s27, %s2138_s24  ;;  %p2144_p9 = scmp.lt.s32.totalorder %s2138_s24, %s2138_s24 }
  0x50   :  { %p2145_p10 = por %p2144_p9, %p2143_p8 }
  0x52   :  { %p2146_p11 = pnand %p2145_p10, %p2139_p7 }
  0x54   :  { %2149 = shalt.err (!%p2146_p11)
}
  0x55   :  { %78 = dma.hbm_to_vmem [thread:$0]  %s2707_s4, 256, %s73_s27, [#allocation11], %s2205_s15, %s2205_s15, %s2206_s16  }
  0x56   :  { %2194 = dma.done.wait [#allocation5], 1024  }
  0x57   :  { %2195 = vsyncadd [#allocation5], 4294966272 }
  0x58   :  { %2196 = dma.done.wait [#allocation8], 384  }
  0x59   :  { %2197 = vsyncadd [#allocation8], 4294966912 }
  0x5a   :  { %2198 = dma.done.wait [#allocation11], 512  }
  0x5b   :  { %2199 = vsyncadd [#allocation11], 4294966784  ;;  %v2213_v0 = vmov 0.0   ;;  %vm2214_vm0 = vmmov 0   ;;  %v1955_v1 = vld [vmem:[#allocation7] sm:$0xff]   ;;  %v1956_v2 = vld [vmem:[#allocation10] sm:$0xff]   ;;  %v99_v14 = vlaneseq }
  0x5c   :  { %1798 = vmatprep.subr.bf16.mxu1 %v2213_v0  ;;  %1802 = vmatprep.mubr.msk.bf16.mxu1 %vm2214_vm0, %v2213_v0  ;;  %v106_v3 = vld [vmem:[#allocation4] sm:$0xff]  ;;  %v107_v4 = vld [vmem:[#allocation4 + $0x8] sm:$0xff]  ;;  %vm133_vm1 = vcmask 130048   ;;  %v108_v5 = vld [vmem:[#allocation4 + $0x10] sm:$0xff]  ;;  %v2215_v10 = vmov 0   ;;  %v2216_v24 = vmov 0.5  }
  0x5d   :  { %1788 = vmatprep.subr.bf16.mxu0 %v1955_v1  ;;  %1799 = vmatpush3.bf16.msra.mxu1 %v1956_v2  ;;  %v114_v6 = vpack.c.bf16 %v107_v4, %v106_v3  ;;  %v109_v7 = vld [vmem:[#allocation4 + $0x18] sm:$0xff]  ;;  %v1957_v9 = vld [vmem:[#allocation10 + $0x8] sm:$0xff]   ;;  %v100_v21 = vand.u32 127, %v99_v14  ;;  %vm236_vm5 = vcmask 261120   ;;  %v111_v58 = vld [vmem:[#allocation4 + $0x28] sm:$0xff]  ;;  %s2219_s29 = smov [#allocation14]  }
  0x5e   :  { %1789 = vmatpush3.bf16.msra.mxu0 %v1955_v1  ;;  %1800 = vmatprep.subr.bf16.mxu1 %v2213_v0  ;;  %v115_v8 = vpack.c.bf16 %v109_v7, %v108_v5  ;;  %v2355_v11 = vld [vmem:[%s2708_s5] ss:$0 sm:$0xff]  ;;  %s2217_s5 = smov 32   ;;  %v1958_v35 = vld [vmem:[#allocation10] sm:$0xff]   ;;  %v112_v60 = vld [vmem:[#allocation4 + $0x30] sm:$0xff]  ;;  %s1666_s30 = sshll.u32 %s2219_s29, 4  ;;  %s1667_s30 = int_to_ptr.vmem [resolvable:$true] %s1666_s30 }
  0x5f   :  { %1814 = vmatprep.subr.bf16.mxu0 %v2213_v0  ;;  %1790 = vmatprep.mubr.msk.bf16.mxu0 %vm133_vm1, %v114_v6  ;;  %vm101_vm2 = vcmp.ge.s32.totalorder %v100_v21, 64  ;;  %vm102_vm3 = vcmp.lt.s32.totalorder %v100_v21, 96  ;;  %v1959_v36 = vld [vmem:[#allocation10 + $0x8] sm:$0xff]   ;;  %v1960_v56 = vld [vmem:[#allocation10] sm:$0xff]   ;;  %s2150_s1 = scalar_lea.vmem %s1667_s30, 256  ;;  %p2155_p13 = scmp.lt.s32.totalorder %s1667_s30, %s1667_s30 }
  0x60   :  { %vm103_vm4 = vmand %vm101_vm2, %vm102_vm3  ;;  %v110_v57 = vld [vmem:[#allocation4 + $0x20] sm:$0xff]  ;;  %v113_v61 = vld [vmem:[#allocation4 + $0x38] sm:$0xff]  ;;  %p2151_p12 = scmp.ne.s32.totalorder %s1667_s30, %s2150_s1  ;;  %p2156_p0 = scmp.lt.s32.totalorder %s2150_s1, %s2150_s1 }
  0x61   :  { %1791 = vmatmul.mubr.msk.bf16.vlgmr.msra.gmra.mrb[0].mxu0 %vm133_vm1, %v115_v8  ;;  %1801 = vmatpush3.bf16.msra.mxu1 %v1957_v9  ;;  %v2362_v25 = vsel %vm103_vm4, 1.0, %v2216_v24  ;;  %v2364_v27 = vsel %vm103_vm4, 0.0, %v2216_v24  ;;  %v116_v59 = vpack.c.bf16 %v111_v58, %v110_v57  ;;  %v117_v62 = vpack.c.bf16 %v113_v61, %v112_v60  ;;  %v1961_v63 = vld [vmem:[#allocation10 + $0x8] sm:$0xff]  }
  0x62   :  { %1806 = vmatprep.subr.bf16.mxu1 %v2213_v0  ;;  %1815 = vmatpush3.bf16.msra.mxu0 %v1960_v56  ;;  %p2157_p1 = por %p2156_p0, %p2155_p13 }
  0x63   :  { %1794 = vmatprep.mubr.msk.bf16.mxu0 %vm133_vm1, %v116_v59  ;;  %1816 = vmatprep.subr.bf16.mxu0 %v2213_v0 }
  0x64   :  { %1803 = vmatmul.mubr.bf16.vlgmr.msra.gmra.mrb[0].mxu1 %v2215_v10  ;;  %p2158_p2 = pnand %p2157_p1, %p2151_p12 }
  0x65   :  { %1810 = vmatprep.mubr.msk.bf16.mxu1 %vm2214_vm0, %v2213_v0  ;;  %1807 = vmatpush3.bf16.msra.mxu1 %v1958_v35 }
  0x66   :  { %1808 = vmatprep.subr.bf16.mxu1 %v2213_v0  ;;  %1817 = vmatpush3.bf16.msra.mxu0 %v1961_v63 }
  0x67   :  { %1830 = vmatprep.subr.bf16.mxu0 %v2213_v0 }
  0x69   :  { %1809 = vmatpush3.bf16.msra.mxu1 %v1959_v36  ;;  %1795 = vmatmul.mubr.msk.bf16.gmra.mrb[4].mxu0 %vm133_vm1, %v117_v62 }
  0x6a   :  { %1822 = vmatprep.subr.bf16.mxu1 %v2213_v0  ;;  %1818 = vmatprep.mubr.msk.bf16.mxu0 %vm2214_vm0, %v2213_v0 }
 0x134   :  { %v2357_v12 = vpop.f32.mrb[0].mxu0 }
 0x135   :  { %v180_v13 = vpop.f32.mrb[1].mxu0 }
 0x136   :  { %v181_v15 = vadd.f32 %v2355_v11, %v180_v13  ;;  %v2360_v16 = vpop.f32.mrb[2].mxu0  ;;  %v189_v13 = vadd.f32 %v2357_v12, %v2355_v11 }
 0x137   :  { %v183_v17 = vpop.f32.mrb[3].mxu0  ;;  %v274_v18 = vpop.f32.mrb[0].mxu1  ;;  %v192_v36 = vadd.f32 %v2360_v16, %v2355_v11 }
 0x138   :  { %v280_v19 = vadd.f32 %v274_v18, %v181_v15  ;;  %v1804_v20 = vpop.f32.mrb[1].mxu1  ;;  %v184_v42 = vadd.f32 %v2355_v11, %v183_v17 }
 0x139   :  { %v277_v22 = vpop.f32.mrb[2].mxu1 }
 0x13a   :  { %1976 = vtanh.f32 %v280_v19  ;;  %v1805_v23 = vpop.f32.mrb[3].mxu1 }
 0x13c   :  { %v2398_v5 = vpop.f32.mrb[4].mxu0 }
 0x13d   :  { %v2400_v6 = vpop.f32.mrb[5].mxu0 }
 0x13e   :  { %v2402_v7 = vpop.f32.mrb[6].mxu0  ;;  %v197_v57 = vadd.f32 %v2355_v11, %v2400_v6 }
 0x13f   :  { %v2404_v8 = vpop.f32.mrb[7].mxu0 }
 0x144   :  { %v1977_v26 = vpop.eup %1976 }
 0x145   :  { %v282_v28 = vmul.f32 %v1977_v26, %v2362_v25 }
 0x147   :  { %v283_v29 = vadd.f32 %v282_v28, %v2364_v27 }
 0x149   :  { %286 = vrot.lane.b32.xlu0 %v283_v29, %s2205_s15  ;;  %v284_v32 = vmul.f32 0.0, %v283_v29 }
 0x1bb   :  { %v287_v30 = vpop.permute.xlu0 %286 }
 0x1bc   :  { %v289_v31 = vmul.f32 %v287_v30, %v283_v29  ;;  %v1963_v30 = vld [vmem:[#allocation10 + $0x8] sm:$0xff]  }
 0x1be   :  { %291 = vrot.lane.b32.xlu0 %v289_v31, %s2217_s5 }
 0x230   :  { %v292_v33 = vpop.permute.xlu0 %291 }
 0x231   :  { %v294_v34 = vadd.f32 %v292_v33, %v284_v32 }
 0x233   :  { %1978 = vtanh.f32 %v294_v34 }
 0x23d   :  { %v1979_v37 = vpop.eup %1978 }
 0x23e   :  { %297 = vrot.lane.b32.xlu1 %v1979_v37, %s2205_s15 }
 0x2b0   :  { %v298_v38 = vpop.permute.xlu1 %297 }
 0x2b1   :  { %v2373_v39 = vmul.f32 %v298_v38, %v283_v29  ;;  %v1962_v29 = vld [vmem:[#allocation10] sm:$0xff]  }
 0x2b3   :  { %v308_v40 = vpack.c.bf16 %v2373_v39, %v2373_v39 }
 0x2b5   :  { %314 = vrot.lane.b32.xlu1 %v308_v40, %s2217_s5 }
 0x327   :  { %v315_v41 = vpop.permute.xlu1 %314 }
 0x328   :  { %1811 = vmatmul.mubr.msk.bf16.vlgmr.msra.gmra.mrb[4].mxu1 %vm236_vm5, %v315_v41 }
 0x329   :  { %1826 = vmatprep.mubr.msk.bf16.mxu1 %vm2214_vm0, %v2213_v0  ;;  %1823 = vmatpush3.bf16.msra.mxu1 %v1962_v29 }
 0x32a   :  { %1824 = vmatprep.subr.bf16.mxu1 %v2213_v0 }
 0x32d   :  { %1825 = vmatpush3.bf16.msra.mxu1 %v1963_v30 }
 0x32e   :  { %1838 = vmatprep.subr.bf16.mxu1 %v2213_v0 }
 0x3fb   :  { %v365_v43 = vpop.f32.mrb[4].mxu1 }
 0x3fc   :  { %v371_v44 = vadd.f32 %v365_v43, %v184_v42  ;;  %v1812_v45 = vpop.f32.mrb[5].mxu1 }
 0x3fd   :  { %v368_v46 = vpop.f32.mrb[6].mxu1 }
 0x3fe   :  { %1980 = vtanh.f32 %v371_v44  ;;  %v1813_v47 = vpop.f32.mrb[7].mxu1 }
 0x408   :  { %v1981_v48 = vpop.eup %1980 }
 0x409   :  { %v373_v49 = vmul.f32 %v1981_v48, %v2362_v25 }
 0x40b   :  { %v374_v50 = vadd.f32 %v373_v49, %v2364_v27 }
 0x40d   :  { %377 = vrot.lane.b32.xlu0 %v374_v50, %s2205_s15  ;;  %v375_v53 = vmul.f32 %v374_v50, %v294_v34 }
 0x47f   :  { %v378_v51 = vpop.permute.xlu0 %377 }
 0x480   :  { %v380_v52 = vmul.f32 %v378_v51, %v374_v50  ;;  %v1965_v51 = vld [vmem:[#allocation10 + $0x8] sm:$0xff]  }
 0x482   :  { %382 = vrot.lane.b32.xlu1 %v380_v52, %s2217_s5 }
 0x4f4   :  { %v383_v54 = vpop.permute.xlu1 %382 }
 0x4f5   :  { %v385_v55 = vadd.f32 %v383_v54, %v375_v53 }
 0x4f7   :  { %1982 = vtanh.f32 %v385_v55 }
 0x501   :  { %v1983_v1 = vpop.eup %1982 }
 0x502   :  { %388 = vrot.lane.b32.xlu0 %v1983_v1, %s2205_s15 }
 0x574   :  { %v389_v2 = vpop.permute.xlu0 %388 }
 0x575   :  { %v2393_v3 = vmul.f32 %v389_v2, %v374_v50  ;;  %v1964_v50 = vld [vmem:[#allocation10] sm:$0xff]  }
 0x577   :  { %v400_v4 = vpack.c.bf16 %v2393_v3, %v2393_v3 }
 0x579   :  { %406 = vrot.lane.b32.xlu1 %v400_v4, %s2217_s5 }
 0x5eb   :  { %v407_v9 = vpop.permute.xlu1 %406 }
 0x5ec   :  { %1819 = vmatmul.mubr.msk.bf16.vlgmr.msra.gmra.mrb[8].mxu0 %vm236_vm5, %v407_v9 }
 0x5ed   :  { %1834 = vmatprep.mubr.msk.bf16.mxu0 %vm2214_vm0, %v2213_v0  ;;  %1831 = vmatpush3.bf16.msra.mxu0 %v1964_v50 }
 0x5ee   :  { %1832 = vmatprep.subr.bf16.mxu0 %v2213_v0 }
 0x5f1   :  { %1833 = vmatpush3.bf16.msra.mxu0 %v1965_v51 }
 0x5f2   :  { %1846 = vmatprep.subr.bf16.mxu0 %v2213_v0 }
 0x6bf   :  { %v457_v14 = vpop.f32.mrb[8].mxu0 }
 0x6c0   :  { %v463_v15 = vadd.f32 %v457_v14, %v189_v13  ;;  %v1820_v17 = vpop.f32.mrb[9].mxu0 }
 0x6c1   :  { %v460_v18 = vpop.f32.mrb[10].mxu0  ;;  %v1967_v17 = vld [vmem:[#allocation10 + $0x8] sm:$0xff]  }
 0x6c2   :  { %1984 = vtanh.f32 %v463_v15  ;;  %v1821_v19 = vpop.f32.mrb[11].mxu0  ;;  %v1966_v15 = vld [vmem:[#allocation10] sm:$0xff]  }
 0x6cc   :  { %v1985_v20 = vpop.eup %1984 }
 0x6cd   :  { %v465_v21 = vmul.f32 %v1985_v20, %v2362_v25 }
 0x6cf   :  { %v466_v22 = vadd.f32 %v465_v21, %v2364_v27 }
 0x6d1   :  { %469 = vrot.lane.b32.xlu0 %v466_v22, %s2205_s15  ;;  %v467_v26 = vmul.f32 %v466_v22, %v385_v55 }
 0x743   :  { %v470_v23 = vpop.permute.xlu0 %469 }
 0x744   :  { %v472_v24 = vmul.f32 %v470_v23, %v466_v22  ;;  %v200_v23 = vadd.f32 %v2355_v11, %v2404_v8 }
 0x746   :  { %474 = vrot.lane.b32.xlu1 %v472_v24, %s2217_s5 }
 0x7b8   :  { %v475_v28 = vpop.permute.xlu1 %474 }
 0x7b9   :  { %v477_v12 = vadd.f32 %v475_v28, %v467_v26 }
 0x7bb   :  { %1986 = vtanh.f32 %v477_v12 }
 0x7c5   :  { %v1987_v31 = vpop.eup %1986 }
 0x7c6   :  { %480 = vrot.lane.b32.xlu0 %v1987_v31, %s2205_s15 }
 0x838   :  { %v481_v32 = vpop.permute.xlu0 %480 }
 0x839   :  { %v2418_v33 = vmul.f32 %v481_v32, %v466_v22 }
 0x83b   :  { %v492_v34 = vpack.c.bf16 %v2418_v33, %v2418_v33 }
 0x83d   :  { %498 = vrot.lane.b32.xlu1 %v492_v34, %s2217_s5 }
 0x8af   :  { %v499_v35 = vpop.permute.xlu1 %498 }
 0x8b0   :  { %1827 = vmatmul.mubr.msk.bf16.vlgmr.msra.gmra.mrb[8].mxu1 %vm236_vm5, %v499_v35 }
 0x8b1   :  { %1842 = vmatprep.mubr.msk.bf16.mxu1 %vm2214_vm0, %v2213_v0  ;;  %1839 = vmatpush3.bf16.msra.mxu1 %v1966_v15 }
 0x8b2   :  { %1840 = vmatprep.subr.bf16.mxu1 %v2213_v0 }
 0x8b5   :  { %1841 = vmatpush3.bf16.msra.mxu1 %v1967_v17 }
 0x8b6   :  { %1854 = vmatprep.subr.bf16.mxu1 %v2213_v0 }
 0x983   :  { %v549_v37 = vpop.f32.mrb[8].mxu1 }
 0x984   :  { %v555_v38 = vadd.f32 %v549_v37, %v192_v36  ;;  %v1828_v40 = vpop.f32.mrb[9].mxu1 }
 0x985   :  { %v552_v41 = vpop.f32.mrb[10].mxu1  ;;  %v1969_v40 = vld [vmem:[#allocation10 + $0x8] sm:$0xff]  }
 0x986   :  { %1988 = vtanh.f32 %v555_v38  ;;  %v1829_v42 = vpop.f32.mrb[11].mxu1  ;;  %v1968_v38 = vld [vmem:[#allocation10] sm:$0xff]  }
 0x990   :  { %v1989_v43 = vpop.eup %1988 }
 0x991   :  { %v557_v44 = vmul.f32 %v1989_v43, %v2362_v25 }
 0x993   :  { %v558_v45 = vadd.f32 %v557_v44, %v2364_v27 }
 0x995   :  { %561 = vrot.lane.b32.xlu0 %v558_v45, %s2205_s15  ;;  %v559_v48 = vmul.f32 %v558_v45, %v477_v12 }
 0xa07   :  { %v562_v46 = vpop.permute.xlu0 %561 }
 0xa08   :  { %v564_v47 = vmul.f32 %v562_v46, %v558_v45  ;;  %v205_v46 = vadd.f32 %v2398_v5, %v2355_v11 }
 0xa0a   :  { %566 = vrot.lane.b32.xlu1 %v564_v47, %s2217_s5 }
 0xa7c   :  { %v567_v49 = vpop.permute.xlu1 %566 }
 0xa7d   :  { %v569_v16 = vadd.f32 %v567_v49, %v559_v48 }
 0xa7f   :  { %1990 = vtanh.f32 %v569_v16 }
 0xa89   :  { %v1991_v52 = vpop.eup %1990 }
 0xa8a   :  { %572 = vrot.lane.b32.xlu0 %v1991_v52, %s2205_s15 }
 0xafc   :  { %v573_v53 = vpop.permute.xlu0 %572 }
 0xafd   :  { %v2435_v54 = vmul.f32 %v573_v53, %v558_v45 }
 0xaff   :  { %v584_v55 = vpack.c.bf16 %v2435_v54, %v2435_v54 }
 0xb01   :  { %590 = vrot.lane.b32.xlu1 %v584_v55, %s2217_s5 }
 0xb73   :  { %v591_v56 = vpop.permute.xlu1 %590 }
 0xb74   :  { %1835 = vmatmul.mubr.msk.bf16.vlgmr.msra.gmra.mrb[12].mxu0 %vm236_vm5, %v591_v56 }
 0xb75   :  { %1850 = vmatprep.mubr.msk.bf16.mxu0 %vm2214_vm0, %v2213_v0  ;;  %1847 = vmatpush3.bf16.msra.mxu0 %v1968_v38 }
 0xb76   :  { %1848 = vmatprep.subr.bf16.mxu0 %v2213_v0 }
 0xb79   :  { %1849 = vmatpush3.bf16.msra.mxu0 %v1969_v40 }
 0xc47   :  { %v641_v58 = vpop.f32.mrb[12].mxu0 }
 0xc48   :  { %v647_v59 = vadd.f32 %v641_v58, %v197_v57  ;;  %v1836_v60 = vpop.f32.mrb[13].mxu0 }
 0xc49   :  { %v644_v61 = vpop.f32.mrb[14].mxu0 }
 0xc4a   :  { %1992 = vtanh.f32 %v647_v59  ;;  %v1837_v62 = vpop.f32.mrb[15].mxu0  ;;  %v1970_v61 = vld [vmem:[#allocation9] sm:$0xff]  }
 0xc4b   :  { %v1971_v62 = vld [vmem:[#allocation9 + $0x8] sm:$0xff]   ;;  %1862 = vmatprep.subr.bf16.mxu0 %v1970_v61 }
 0xc54   :  { %v1993_v63 = vpop.eup %1992 }
 0xc55   :  { %v649_v1 = vmul.f32 %v1993_v63, %v2362_v25  ;;  %v1973_v63 = vld [vmem:[#allocation10 + $0x8] sm:$0xff]  }
 0xc57   :  { %v650_v2 = vadd.f32 %v649_v1, %v2364_v27 }
 0xc59   :  { %653 = vrot.lane.b32.xlu0 %v650_v2, %s2205_s15  ;;  %v651_v13 = vmul.f32 %v650_v2, %v569_v16 }
 0xccb   :  { %v654_v4 = vpop.permute.xlu0 %653 }
 0xccc   :  { %v656_v9 = vmul.f32 %v654_v4, %v650_v2 }
 0xcce   :  { %658 = vrot.lane.b32.xlu1 %v656_v9, %s2217_s5 }
 0xd40   :  { %v659_v14 = vpop.permute.xlu1 %658 }
 0xd41   :  { %v661_v6 = vadd.f32 %v659_v14, %v651_v13 }
 0xd43   :  { %1994 = vtanh.f32 %v661_v6 }
 0xd4d   :  { %v1995_v18 = vpop.eup %1994 }
 0xd4e   :  { %664 = vrot.lane.b32.xlu0 %v1995_v18, %s2205_s15  ;;  %v2505_v18 = vld [vmem:[#allocation12] sm:$0xff]  }
 0xdc0   :  { %v665_v19 = vpop.permute.xlu0 %664 }
 0xdc1   :  { %v2452_v20 = vmul.f32 %v665_v19, %v650_v2  ;;  %v2510_v19 = vld [vmem:[#allocation12 + $0x8] sm:$0xff]  }
 0xdc3   :  { %v676_v21 = vpack.c.bf16 %v2452_v20, %v2452_v20 }
 0xdc5   :  { %682 = vrot.lane.b32.xlu1 %v676_v21, %s2217_s5 }
 0xe37   :  { %v683_v22 = vpop.permute.xlu1 %682 }
 0xe38   :  { %1843 = vmatmul.mubr.msk.bf16.vlgmr.msra.gmra.mrb[12].mxu1 %vm236_vm5, %v683_v22 }
 0xe39   :  { %1858 = vmatprep.mubr.msk.bf16.mxu1 %vm2214_vm0, %v2213_v0 }
 0xf0b   :  { %v733_v24 = vpop.f32.mrb[12].mxu1 }
 0xf0c   :  { %v739_v26 = vadd.f32 %v733_v24, %v200_v23  ;;  %v1844_v28 = vpop.f32.mrb[13].mxu1 }
 0xf0d   :  { %v736_v12 = vpop.f32.mrb[14].mxu1 }
 0xf0e   :  { %1996 = vtanh.f32 %v739_v26  ;;  %v1845_v29 = vpop.f32.mrb[15].mxu1 }
 0xf18   :  { %v1997_v30 = vpop.eup %1996 }
 0xf19   :  { %v741_v31 = vmul.f32 %v1997_v30, %v2362_v25 }
 0xf1b   :  { %v742_v32 = vadd.f32 %v741_v31, %v2364_v27 }
 0xf1d   :  { %745 = vrot.lane.b32.xlu0 %v742_v32, %s2205_s15  ;;  %v743_v36 = vmul.f32 %v742_v32, %v661_v6 }
 0xf8f   :  { %v746_v34 = vpop.permute.xlu0 %745 }
 0xf90   :  { %v748_v35 = vmul.f32 %v746_v34, %v742_v32 }
 0xf92   :  { %750 = vrot.lane.b32.xlu1 %v748_v35, %s2217_s5 }
0x1004   :  { %v751_v37 = vpop.permute.xlu1 %750 }
0x1005   :  { %v753_v8 = vadd.f32 %v751_v37, %v743_v36 }
0x1007   :  { %1998 = vtanh.f32 %v753_v8 }
0x1011   :  { %v1999_v41 = vpop.eup %1998 }
0x1012   :  { %756 = vrot.lane.b32.xlu0 %v1999_v41, %s2205_s15 }
0x1084   :  { %v757_v42 = vpop.permute.xlu0 %756 }
0x1085   :  { %v2468_v43 = vmul.f32 %v757_v42, %v742_v32  ;;  %v2537_v32 = vld [vmem:[%s2709_s6] ss:$0 sm:$0xff]  ;;  %s2218_s6 = smov 96  }
0x1087   :  { %v768_v44 = vpack.c.bf16 %v2468_v43, %v2468_v43 }
0x1089   :  { %774 = vrot.lane.b32.xlu1 %v768_v44, %s2217_s5 }
0x10fb   :  { %v775_v45 = vpop.permute.xlu1 %774 }
0x10fc   :  { %1851 = vmatmul.mubr.msk.bf16.vlgmr.msra.gmra.mrb[16].mxu0 %vm236_vm5, %v775_v45 }
0x10fd   :  { %1863 = vmatpush3.bf16.msra.mxu0 %v1970_v61 }
0x10fe   :  { %1864 = vmatprep.subr.bf16.mxu0 %v1971_v62 }
0x1101   :  { %1865 = vmatpush3.bf16.msra.mxu0 %v1971_v62 }
0x1102   :  { %1890 = vmatprep.subr.bf16.mxu0 %v2213_v0 }
0x11cf   :  { %v825_v47 = vpop.f32.mrb[16].mxu0 }
0x11d0   :  { %v831_v48 = vadd.f32 %v825_v47, %v205_v46  ;;  %v1852_v49 = vpop.f32.mrb[17].mxu0 }
0x11d1   :  { %v828_v16 = vpop.f32.mrb[18].mxu0 }
0x11d2   :  { %2000 = vtanh.f32 %v831_v48  ;;  %v1853_v50 = vpop.f32.mrb[19].mxu0 }
0x11dc   :  { %v2001_v51 = vpop.eup %2000 }
0x11dd   :  { %v833_v52 = vmul.f32 %v2001_v51, %v2362_v25 }
0x11df   :  { %v834_v53 = vadd.f32 %v833_v52, %v2364_v27 }
0x11e1   :  { %837 = vrot.lane.b32.xlu0 %v834_v53, %s2205_s15  ;;  %v835_v5 = vmul.f32 %v834_v53, %v753_v8 }
0x1253   :  { %v838_v55 = vpop.permute.xlu0 %837 }
0x1254   :  { %v840_v56 = vmul.f32 %v838_v55, %v834_v53 }
0x1256   :  { %842 = vrot.lane.b32.xlu1 %v840_v56, %s2217_s5 }
0x125a   :  { %302 = vrot.lane.b32.xlu1 %v2373_v39, %s2217_s5 }
0x125e   :  { %485 = vrot.lane.b32.xlu1 %v2418_v33, %s2217_s5  ;;  %v1972_v33 = vld [vmem:[#allocation10] sm:$0xff]  }
0x125f   :  { %1855 = vmatpush3.bf16.msra.mxu1 %v1972_v33 }
0x1260   :  { %1856 = vmatprep.subr.bf16.mxu1 %v2213_v0 }
0x1263   :  { %1857 = vmatpush3.bf16.msra.mxu1 %v1973_v63 }
0x1264   :  { %1874 = vmatprep.subr.bf16.mxu1 %v2213_v0 }
0x12c8   :  { %v843_v57 = vpop.permute.xlu1 %842 }
0x12c9   :  { %v2484_v58 = vadd.f32 %v843_v57, %v835_v5 }
0x12cb   :  { %2002 = vtanh.f32 %v2484_v58 }
0x12cc   :  { %v303_v59 = vpop.permute.xlu1 %302 }
0x12cd   :  { %305 = vst.msk [vmem:[#allocation2] sm:$0xff] %vm236_vm5, %v303_v59 }
0x12d0   :  { %v486_v60 = vpop.permute.xlu1 %485 }
0x12d1   :  { %489 = vst.msk [vmem:[#allocation2 + $0x10] sm:$0xff] %vm236_vm5, %v486_v60 }
0x12d5   :  { %v2003_v39 = vpop.eup %2002 }
0x12d6   :  { %848 = vrot.lane.b32.xlu0 %v2003_v39, %s2205_s15 }
0x12d8   :  { %v958_v6 = vld [vmem:[#allocation2 + $0x10] sm:$0xff] }
0x12da   :  { %393 = vrot.lane.b32.xlu0 %v2393_v3, %s2217_s5 }
0x12de   :  { %577 = vrot.lane.b32.xlu0 %v2435_v54, %s2217_s5  ;;  %v956_v54 = vld [vmem:[#allocation2] sm:$0xff] }
0x1348   :  { %v849_v1 = vpop.permute.xlu0 %848 }
0x1349   :  { %v2497_v2 = vmul.f32 %v849_v1, %v834_v53 }
0x134b   :  { %v860_v4 = vpack.c.bf16 %v2497_v2, %v2497_v2 }
0x134c   :  { %v394_v9 = vpop.permute.xlu0 %393 }
0x134d   :  { %397 = vst.msk [vmem:[#allocation2 + $0x8] sm:$0xff] %vm236_vm5, %v394_v9  ;;  %866 = vrot.lane.b32.xlu1 %v860_v4, %s2217_s5 }
0x1350   :  { %v578_v3 = vpop.permute.xlu0 %577 }
0x1351   :  { %581 = vst.msk [vmem:[#allocation2 + $0x18] sm:$0xff] %vm236_vm5, %v578_v3 }
0x1354   :  { %v957_v13 = vld [vmem:[#allocation2 + $0x8] sm:$0xff] }
0x1355   :  { %v964_v14 = vpack.c.bf16 %v957_v13, %v956_v54 }
0x1357   :  { %1866 = vmatprep.mubr.msk.bf16.mxu0 %vm236_vm5, %v964_v14 }
0x1358   :  { %v959_v15 = vld [vmem:[#allocation2 + $0x18] sm:$0xff] }
0x1359   :  { %v965_v17 = vpack.c.bf16 %v959_v15, %v958_v6 }
0x135b   :  { %1867 = vmatmul.mubr.msk.bf16.vlgmr.msra.gmra.mrb[20].mxu0 %vm236_vm5, %v965_v17 }
0x135c   :  { %1891 = vmatpush3.bf16.msra.mxu0 %v2505_v18 }
0x135d   :  { %1892 = vmatprep.subr.bf16.mxu0 %v2213_v0 }
0x1360   :  { %1893 = vmatpush3.bf16.msra.mxu0 %v2510_v19 }
0x1361   :  { %1906 = vmatprep.subr.bf16.mxu0 %v2213_v0 }
0x13bf   :  { %v867_v21 = vpop.permute.xlu1 %866 }
0x13c0   :  { %1859 = vmatmul.mubr.msk.bf16.vlgmr.msra.gmra.mrb[16].mxu1 %vm236_vm5, %v867_v21 }
0x13c1   :  { %1875 = vmatpush3.bf16.msra.mxu1 %v2505_v18  ;;  %1878 = vmatprep.mubr.msk.bf16.mxu1 %vm2214_vm0, %v2213_v0 }
0x13c2   :  { %1876 = vmatprep.subr.bf16.mxu1 %v2213_v0 }
0x13c5   :  { %1877 = vmatpush3.bf16.msra.mxu1 %v2510_v19 }
0x13c6   :  { %1882 = vmatprep.subr.bf16.mxu1 %v2213_v0 }
0x13c8   :  { %1879 = vmatmul.mubr.bf16.vlgmr.msra.gmra.mrb[20].mxu1 %v2215_v10  ;;  %v208_v10 = vadd.f32 %v2402_v7, %v2355_v11 }
0x13c9   :  { %1883 = vmatpush3.bf16.msra.mxu1 %v2505_v18  ;;  %1886 = vmatprep.mubr.msk.bf16.mxu1 %vm2214_vm0, %v2213_v0 }
0x13ca   :  { %1884 = vmatprep.subr.bf16.mxu1 %v2213_v0 }
0x13cd   :  { %1885 = vmatpush3.bf16.msra.mxu1 %v2510_v19 }
0x13ce   :  { %1898 = vmatprep.subr.bf16.mxu1 %v2213_v0 }
0x142e   :  { %v2528_v22 = vpop.f32.mrb[20].mxu0 }
0x142f   :  { %v1037_v23 = vpop.f32.mrb[21].mxu0 }
0x1430   :  { %v2530_v24 = vpop.f32.mrb[22].mxu0  ;;  %v1038_v34 = vadd.f32 %v2537_v32, %v1037_v23 }
0x1431   :  { %v1040_v26 = vpop.f32.mrb[23].mxu0 }
0x1432   :  { %v1041_v39 = vadd.f32 %v2537_v32, %v1040_v26 }
0x1493   :  { %v917_v28 = vpop.f32.mrb[16].mxu1 }
0x1494   :  { %v923_v12 = vadd.f32 %v917_v28, %v208_v10  ;;  %v1860_v29 = vpop.f32.mrb[17].mxu1 }
0x1495   :  { %v920_v30 = vpop.f32.mrb[18].mxu1 }
0x1496   :  { %v1861_v31 = vpop.f32.mrb[19].mxu1 }
0x149b   :  { %v1127_v35 = vpop.f32.mrb[20].mxu1 }
0x149c   :  { %v1133_v36 = vadd.f32 %v1127_v35, %v1038_v34  ;;  %v1880_v37 = vpop.f32.mrb[21].mxu1 }
0x149d   :  { %v1130_v8 = vpop.f32.mrb[22].mxu1 }
0x149e   :  { %2004 = vtanh.f32 %v1133_v36  ;;  %v1881_v38 = vpop.f32.mrb[23].mxu1 }
0x149f   :  { %2006 = vtanh.f32 %v923_v12 }
0x14a8   :  { %v2005_v40 = vpop.eup %2004 }
0x14a9   :  { %v1135_v11 = vmul.f32 %v2005_v40, %v2362_v25  ;;  %v2007_v47 = vpop.eup %2006 }
0x14aa   :  { %v925_v48 = vmul.f32 %v2007_v47, %v2362_v25 }
0x14ab   :  { %v1136_v7 = vadd.f32 %v1135_v11, %v2364_v27  ;;  %v1046_v11 = vadd.f32 %v2528_v22, %v2537_v32 }
0x14ac   :  { %v926_v16 = vadd.f32 %v925_v48, %v2364_v27 }
0x14ad   :  { %1139 = vrot.lane.b32.xlu0 %v1136_v7, %s2205_s15  ;;  %v1137_v44 = vmul.f32 0.0, %v1136_v7 }
0x14ae   :  { %v927_v5 = vmul.f32 %v926_v16, %v2484_v58 }
0x151f   :  { %v1140_v41 = vpop.permute.xlu0 %1139 }
0x1520   :  { %v1142_v42 = vmul.f32 %v1140_v41, %v1136_v7 }
0x1522   :  { %1144 = vrot.lane.b32.xlu1 %v1142_v42, %s2217_s5 }
0x1594   :  { %v1145_v45 = vpop.permute.xlu1 %1144 }
0x1595   :  { %v1147_v46 = vadd.f32 %v1145_v45, %v1137_v44 }
0x1597   :  { %2008 = vtanh.f32 %v1147_v46 }
0x15a1   :  { %v2009_v49 = vpop.eup %2008 }
0x15a2   :  { %1150 = vrot.lane.b32.xlu0 %v2009_v49, %s2205_s15 }
0x15a6   :  { %929 = vrot.lane.b32.xlu0 %v926_v16, %s2205_s15 }
0x1614   :  { %v1151_v50 = vpop.permute.xlu0 %1150 }
0x1615   :  { %v1153_v51 = vmul.f32 %v1151_v50, %v1136_v7 }
0x1617   :  { %v1155_v52 = vpack.c.bf16 %v1153_v51, %v1153_v51 }
0x1618   :  { %v930_v53 = vpop.permute.xlu0 %929 }
0x1619   :  { %v932_v55 = vmul.f32 %v930_v53, %v926_v16  ;;  %1157 = vrot.lane.b32.xlu1 %v1155_v52, %s2217_s5 }
0x161b   :  { %934 = vrot.lane.b32.xlu0 %v932_v55, %s2217_s5 }
0x168b   :  { %v1158_v56 = vpop.permute.xlu1 %1157 }
0x168c   :  { %1887 = vmatmul.mubr.msk.bf16.vlgmr.msra.gmra.mrb[24].mxu1 %vm236_vm5, %v1158_v56 }
0x168d   :  { %v935_v57 = vpop.permute.xlu0 %934  ;;  %1899 = vmatpush3.bf16.msra.mxu1 %v2505_v18  ;;  %1902 = vmatprep.mubr.msk.bf16.mxu1 %vm2214_vm0, %v2213_v0 }
0x168e   :  { %v2555_v59 = vadd.f32 %v935_v57, %v927_v5  ;;  %1900 = vmatprep.subr.bf16.mxu1 %v2213_v0  ;;  %v1049_v57 = vadd.f32 %v2530_v24, %v2537_v32 }
0x1690   :  { %2010 = vtanh.f32 %v2555_v59 }
0x1691   :  { %1901 = vmatpush3.bf16.msra.mxu1 %v2510_v19 }
0x1692   :  { %1914 = vmatprep.subr.bf16.mxu1 %v2213_v0 }
0x169a   :  { %v2011_v60 = vpop.eup %2010 }
0x169b   :  { %940 = vrot.lane.b32.xlu0 %v2011_v60, %s2205_s15 }
0x169f   :  { %669 = vrot.lane.b32.xlu0 %v2452_v20, %s2217_s5 }
0x16a3   :  { %853 = vrot.lane.b32.xlu0 %v2497_v2, %s2217_s5 }
0x170d   :  { %v941_v58 = vpop.permute.xlu0 %940 }
0x170e   :  { %v943_v21 = vmul.f32 %v941_v58, %v926_v16 }
0x1711   :  { %v670_v61 = vpop.permute.xlu0 %669 }
0x1712   :  { %673 = vst.msk [vmem:[#allocation2 + $0x20] sm:$0xff] %vm236_vm5, %v670_v61 }
0x1715   :  { %v854_v62 = vpop.permute.xlu0 %853 }
0x1716   :  { %857 = vst.msk [vmem:[#allocation2 + $0x30] sm:$0xff] %vm236_vm5, %v854_v62 }
0x1719   :  { %v960_v29 = vld [vmem:[#allocation2 + $0x20] sm:$0xff] }
0x175f   :  { %v1196_v33 = vpop.f32.mrb[24].mxu1 }
0x1760   :  { %v1202_v63 = vadd.f32 %v1196_v33, %v1041_v39  ;;  %v1888_v1 = vpop.f32.mrb[25].mxu1 }
0x1761   :  { %v1199_v4 = vpop.f32.mrb[26].mxu1 }
0x1762   :  { %2012 = vtanh.f32 %v1202_v63  ;;  %v1889_v9 = vpop.f32.mrb[27].mxu1 }
0x176c   :  { %v2013_v3 = vpop.eup %2012 }
0x176d   :  { %v1204_v20 = vmul.f32 %v2013_v3, %v2362_v25 }
0x176f   :  { %v1205_v2 = vadd.f32 %v1204_v20, %v2364_v27 }
0x1771   :  { %1208 = vrot.lane.b32.xlu1 %v1205_v2, %s2205_s15  ;;  %v1206_v14 = vmul.f32 %v1205_v2, %v1147_v46 }
0x17e3   :  { %v1209_v54 = vpop.permute.xlu1 %1208 }
0x17e4   :  { %v1211_v13 = vmul.f32 %v1209_v54, %v1205_v2 }
0x17e6   :  { %1213 = vrot.lane.b32.xlu1 %v1211_v13, %s2217_s5 }
0x1858   :  { %v1214_v6 = vpop.permute.xlu1 %1213 }
0x1859   :  { %v1216_v15 = vadd.f32 %v1214_v6, %v1206_v14 }
0x185b   :  { %2014 = vtanh.f32 %v1216_v15 }
0x1865   :  { %v2015_v17 = vpop.eup %2014 }
0x1866   :  { %1219 = vrot.lane.b32.xlu1 %v2015_v17, %s2205_s15 }
0x186a   :  { %761 = vrot.lane.b32.xlu1 %v2468_v43, %s2217_s5  ;;  %v962_v43 = vld [vmem:[#allocation2 + $0x30] sm:$0xff] }
0x186e   :  { %945 = vrot.lane.b32.xlu1 %v943_v21, %s2217_s5 }
0x18d8   :  { %v1220_v23 = vpop.permute.xlu1 %1219 }
0x18d9   :  { %v1222_v26 = vmul.f32 %v1220_v23, %v1205_v2 }
0x18db   :  { %v1224_v10 = vpack.c.bf16 %v1222_v26, %v1222_v26 }
0x18dc   :  { %v762_v28 = vpop.permute.xlu1 %761 }
0x18dd   :  { %765 = vst.msk [vmem:[#allocation2 + $0x28] sm:$0xff] %vm236_vm5, %v762_v28  ;;  %1226 = vrot.lane.b32.xlu0 %v1224_v10, %s2217_s5 }
0x18e0   :  { %v946_v12 = vpop.permute.xlu1 %945 }
0x18e1   :  { %949 = vst.msk [vmem:[#allocation2 + $0x38] sm:$0xff] %vm236_vm5, %v946_v12  ;;  %950 = vst.msk [vmem:[#allocation13] sm:$0xff] %vm236_vm5, %v946_v12 }
0x18e4   :  { %v961_v30 = vld [vmem:[#allocation2 + $0x28] sm:$0xff] }
0x18e5   :  { %v966_v31 = vpack.c.bf16 %v961_v30, %v960_v29 }
0x18e7   :  { %1870 = vmatprep.mubr.msk.bf16.mxu0 %vm236_vm5, %v966_v31 }
0x18e8   :  { %v963_v34 = vld [vmem:[#allocation2 + $0x38] sm:$0xff] }
0x18e9   :  { %v967_v35 = vpack.c.bf16 %v963_v34, %v962_v43 }
0x18eb   :  { %1871 = vmatmul.mubr.msk.bf16.gmra.mrb[24].mxu0 %vm236_vm5, %v967_v35 }
0x18ec   :  { %1894 = vmatprep.mubr.msk.bf16.mxu0 %vm2214_vm0, %v2213_v0 }
0x194f   :  { %v1227_v36 = vpop.permute.xlu0 %1226 }
0x1950   :  { %1895 = vmatmul.mubr.msk.bf16.vlgmr.msra.gmra.mrb[28].mxu0 %vm236_vm5, %v1227_v36 }
0x1951   :  { %1907 = vmatpush3.bf16.msra.mxu0 %v2505_v18  ;;  %1910 = vmatprep.mubr.msk.bf16.mxu0 %vm2214_vm0, %v2213_v0 }
0x1952   :  { %1908 = vmatprep.subr.bf16.mxu0 %v2213_v0 }
0x1955   :  { %1909 = vmatpush3.bf16.msra.mxu0 %v2510_v19 }
0x1956   :  { %1922 = vmatprep.subr.bf16.mxu0 %v2213_v0 }
0x19be   :  { %v2592_v37 = vpop.f32.mrb[24].mxu0 }
0x19bf   :  { %v2594_v8 = vpop.f32.mrb[25].mxu0 }
0x19c0   :  { %v2596_v38 = vpop.f32.mrb[26].mxu0 }
0x19c1   :  { %v2598_v40 = vpop.f32.mrb[27].mxu0 }
0x1a23   :  { %v1265_v7 = vpop.f32.mrb[28].mxu0 }
0x1a24   :  { %v1271_v41 = vadd.f32 %v1265_v7, %v1046_v11  ;;  %v1896_v42 = vpop.f32.mrb[29].mxu0 }
0x1a25   :  { %v1268_v44 = vpop.f32.mrb[30].mxu0  ;;  %v1057_v42 = vadd.f32 %v2537_v32, %v2598_v40 }
0x1a26   :  { %2016 = vtanh.f32 %v1271_v41  ;;  %v1897_v45 = vpop.f32.mrb[31].mxu0 }
0x1a30   :  { %v2017_v46 = vpop.eup %2016 }
0x1a31   :  { %v1273_v47 = vmul.f32 %v2017_v46, %v2362_v25 }
0x1a33   :  { %v1274_v48 = vadd.f32 %v1273_v47, %v2364_v27 }
0x1a35   :  { %1277 = vrot.lane.b32.xlu1 %v1274_v48, %s2205_s15  ;;  %v1275_v50 = vmul.f32 %v1274_v48, %v1216_v15  ;;  %v1054_v15 = vadd.f32 %v2537_v32, %v2594_v8 }
0x1aa7   :  { %v1278_v49 = vpop.permute.xlu1 %1277 }
0x1aa8   :  { %v1280_v16 = vmul.f32 %v1278_v49, %v1274_v48 }
0x1aaa   :  { %1282 = vrot.lane.b32.xlu0 %v1280_v16, %s2217_s5 }
0x1b1c   :  { %v1283_v51 = vpop.permute.xlu0 %1282 }
0x1b1d   :  { %v1285_v22 = vadd.f32 %v1283_v51, %v1275_v50 }
0x1b1f   :  { %2018 = vtanh.f32 %v1285_v22 }
0x1b29   :  { %v2019_v52 = vpop.eup %2018 }
0x1b2a   :  { %1288 = vrot.lane.b32.xlu1 %v2019_v52, %s2205_s15 }
0x1b9c   :  { %v1289_v53 = vpop.permute.xlu1 %1288 }
0x1b9d   :  { %v1291_v55 = vmul.f32 %v1289_v53, %v1274_v48 }
0x1b9f   :  { %v1293_v56 = vpack.c.bf16 %v1291_v55, %v1291_v55 }
0x1ba1   :  { %1295 = vrot.lane.b32.xlu0 %v1293_v56, %s2217_s5 }
0x1c13   :  { %v1296_v5 = vpop.permute.xlu0 %1295 }
0x1c14   :  { %1903 = vmatmul.mubr.msk.bf16.vlgmr.msra.gmra.mrb[28].mxu1 %vm236_vm5, %v1296_v5  ;;  %v1062_v5 = vadd.f32 %v2592_v37, %v2537_v32 }
0x1c15   :  { %1915 = vmatpush3.bf16.msra.mxu1 %v2505_v18  ;;  %1918 = vmatprep.mubr.msk.bf16.mxu1 %vm2214_vm0, %v2213_v0 }
0x1c16   :  { %1916 = vmatprep.subr.bf16.mxu1 %v2213_v0 }
0x1c19   :  { %1917 = vmatpush3.bf16.msra.mxu1 %v2510_v19 }
0x1c1a   :  { %1930 = vmatprep.subr.bf16.mxu1 %v2213_v0 }
0x1ce7   :  { %v1334_v60 = vpop.f32.mrb[28].mxu1 }
0x1ce8   :  { %v1340_v58 = vadd.f32 %v1334_v60, %v1049_v57  ;;  %v1904_v61 = vpop.f32.mrb[29].mxu1 }
0x1ce9   :  { %v1337_v62 = vpop.f32.mrb[30].mxu1 }
0x1cea   :  { %2020 = vtanh.f32 %v1340_v58  ;;  %v1905_v39 = vpop.f32.mrb[31].mxu1 }
0x1cf4   :  { %v2021_v33 = vpop.eup %2020 }
0x1cf5   :  { %v1342_v63 = vmul.f32 %v2021_v33, %v2362_v25 }
0x1cf7   :  { %v1343_v1 = vadd.f32 %v1342_v63, %v2364_v27 }
0x1cf9   :  { %1346 = vrot.lane.b32.xlu1 %v1343_v1, %s2205_s15  ;;  %v1344_v3 = vmul.f32 %v1343_v1, %v1285_v22 }
0x1d6b   :  { %v1347_v4 = vpop.permute.xlu1 %1346 }
0x1d6c   :  { %v1349_v9 = vmul.f32 %v1347_v4, %v1343_v1 }
0x1d6e   :  { %1351 = vrot.lane.b32.xlu0 %v1349_v9, %s2217_s5 }
0x1de0   :  { %v1352_v20 = vpop.permute.xlu0 %1351 }
0x1de1   :  { %v1354_v24 = vadd.f32 %v1352_v20, %v1344_v3 }
0x1de3   :  { %2022 = vtanh.f32 %v1354_v24 }
0x1ded   :  { %v2023_v2 = vpop.eup %2022 }
0x1dee   :  { %1357 = vrot.lane.b32.xlu1 %v2023_v2, %s2205_s15 }
0x1e60   :  { %v1358_v54 = vpop.permute.xlu1 %1357 }
0x1e61   :  { %v1360_v13 = vmul.f32 %v1358_v54, %v1343_v1 }
0x1e63   :  { %v1362_v14 = vpack.c.bf16 %v1360_v13, %v1360_v13 }
0x1e65   :  { %1364 = vrot.lane.b32.xlu0 %v1362_v14, %s2217_s5  ;;  %v1065_v14 = vadd.f32 %v2596_v38, %v2537_v32 }
0x1ed7   :  { %v1365_v6 = vpop.permute.xlu0 %1364 }
0x1ed8   :  { %1911 = vmatmul.mubr.msk.bf16.vlgmr.msra.gmra.mrb[32].mxu0 %vm236_vm5, %v1365_v6 }
0x1ed9   :  { %1923 = vmatpush3.bf16.msra.mxu0 %v2505_v18  ;;  %1926 = vmatprep.mubr.msk.bf16.mxu0 %vm2214_vm0, %v2213_v0 }
0x1eda   :  { %1924 = vmatprep.subr.bf16.mxu0 %v2213_v0 }
0x1edd   :  { %1925 = vmatpush3.bf16.msra.mxu0 %v2510_v19 }
0x1fab   :  { %v1403_v17 = vpop.f32.mrb[32].mxu0 }
0x1fac   :  { %v1409_v21 = vadd.f32 %v1403_v17, %v1054_v15  ;;  %v1912_v23 = vpop.f32.mrb[33].mxu0 }
0x1fad   :  { %v1406_v26 = vpop.f32.mrb[34].mxu0 }
0x1fae   :  { %2024 = vtanh.f32 %v1409_v21  ;;  %v1913_v10 = vpop.f32.mrb[35].mxu0 }
0x1fb8   :  { %v2025_v28 = vpop.eup %2024 }
0x1fb9   :  { %v1411_v12 = vmul.f32 %v2025_v28, %v2362_v25 }
0x1fbb   :  { %v1412_v29 = vadd.f32 %v1411_v12, %v2364_v27 }
0x1fbd   :  { %1415 = vrot.lane.b32.xlu1 %v1412_v29, %s2205_s15  ;;  %v1413_v43 = vmul.f32 %v1412_v29, %v1354_v24 }
0x202f   :  { %v1416_v30 = vpop.permute.xlu1 %1415 }
0x2030   :  { %v1418_v31 = vmul.f32 %v1416_v30, %v1412_v29 }
0x2032   :  { %1420 = vrot.lane.b32.xlu0 %v1418_v31, %s2217_s5 }
0x20a4   :  { %v1421_v34 = vpop.permute.xlu0 %1420 }
0x20a5   :  { %v1423_v35 = vadd.f32 %v1421_v34, %v1413_v43 }
0x20a7   :  { %2026 = vtanh.f32 %v1423_v35 }
0x20b1   :  { %v2027_v36 = vpop.eup %2026 }
0x20b2   :  { %1426 = vrot.lane.b32.xlu1 %v2027_v36, %s2205_s15 }
0x2124   :  { %v1427_v8 = vpop.permute.xlu1 %1426 }
0x2125   :  { %v1429_v11 = vmul.f32 %v1427_v8, %v1412_v29 }
0x2127   :  { %v1431_v7 = vpack.c.bf16 %v1429_v11, %v1429_v11 }
0x2129   :  { %1433 = vrot.lane.b32.xlu0 %v1431_v7, %s2217_s5 }
0x219b   :  { %v1434_v41 = vpop.permute.xlu0 %1433 }
0x219c   :  { %1919 = vmatmul.mubr.msk.bf16.vlgmr.msra.gmra.mrb[32].mxu1 %vm236_vm5, %v1434_v41 }
0x219d   :  { %1931 = vmatpush3.bf16.msra.mxu1 %v2505_v18  ;;  %1934 = vmatprep.mubr.msk.bf16.mxu1 %vm2214_vm0, %v2213_v0 }
0x219e   :  { %1932 = vmatprep.subr.bf16.mxu1 %v2213_v0 }
0x21a1   :  { %1933 = vmatpush3.bf16.msra.mxu1 %v2510_v19 }
0x226f   :  { %v1472_v44 = vpop.f32.mrb[32].mxu1 }
0x2270   :  { %v1478_v45 = vadd.f32 %v1472_v44, %v1057_v42  ;;  %v1920_v46 = vpop.f32.mrb[33].mxu1 }
0x2271   :  { %v1475_v47 = vpop.f32.mrb[34].mxu1 }
0x2272   :  { %2028 = vtanh.f32 %v1478_v45  ;;  %v1921_v48 = vpop.f32.mrb[35].mxu1 }
0x227c   :  { %v2029_v49 = vpop.eup %2028 }
0x227d   :  { %v1480_v16 = vmul.f32 %v2029_v49, %v2362_v25 }
0x227f   :  { %v1481_v18 = vadd.f32 %v1480_v16, %v2364_v27 }
0x2281   :  { %1484 = vrot.lane.b32.xlu1 %v1481_v18, %s2205_s15  ;;  %v1482_v19 = vmul.f32 %v1481_v18, %v1423_v35 }
0x22f3   :  { %v1485_v50 = vpop.permute.xlu1 %1484 }
0x22f4   :  { %v1487_v0 = vmul.f32 %v1485_v50, %v1481_v18 }
0x22f6   :  { %1489 = vrot.lane.b32.xlu0 %v1487_v0, %s2217_s5 }
0x2368   :  { %v1490_v51 = vpop.permute.xlu0 %1489 }
0x2369   :  { %v1492_v40 = vadd.f32 %v1490_v51, %v1482_v19 }
0x236b   :  { %2030 = vtanh.f32 %v1492_v40 }
0x2375   :  { %v2031_v22 = vpop.eup %2030 }
0x2376   :  { %1495 = vrot.lane.b32.xlu1 %v2031_v22, %s2205_s15 }
0x23e8   :  { %v1496_v52 = vpop.permute.xlu1 %1495 }
0x23e9   :  { %v1498_v53 = vmul.f32 %v1496_v52, %v1481_v18 }
0x23eb   :  { %v1500_v55 = vpack.c.bf16 %v1498_v53, %v1498_v53 }
0x23ed   :  { %1502 = vrot.lane.b32.xlu0 %v1500_v55, %s2217_s5 }
0x245f   :  { %v1503_v56 = vpop.permute.xlu0 %1502 }
0x2460   :  { %1927 = vmatmul.mubr.msk.bf16.vlgmr.msra.gmra.mrb[36].mxu0 %vm236_vm5, %v1503_v56 }
0x2533   :  { %v1541_v57 = vpop.f32.mrb[36].mxu0 }
0x2534   :  { %v1547_v60 = vadd.f32 %v1541_v57, %v1062_v5  ;;  %v1928_v58 = vpop.f32.mrb[37].mxu0 }
0x2535   :  { %v1544_v61 = vpop.f32.mrb[38].mxu0 }
0x2536   :  { %2032 = vtanh.f32 %v1547_v60  ;;  %v1929_v62 = vpop.f32.mrb[39].mxu0 }
0x2540   :  { %v2033_v39 = vpop.eup %2032 }
0x2541   :  { %v1549_v33 = vmul.f32 %v2033_v39, %v2362_v25 }
0x2543   :  { %v1550_v63 = vadd.f32 %v1549_v33, %v2364_v27 }
0x2545   :  { %1553 = vrot.lane.b32.xlu1 %v1550_v63, %s2205_s15  ;;  %v1551_v9 = vmul.f32 %v1550_v63, %v1492_v40 }
0x25b7   :  { %v1554_v1 = vpop.permute.xlu1 %1553 }
0x25b8   :  { %v1556_v4 = vmul.f32 %v1554_v1, %v1550_v63 }
0x25ba   :  { %1558 = vrot.lane.b32.xlu0 %v1556_v4, %s2217_s5 }
0x262c   :  { %v1559_v3 = vpop.permute.xlu0 %1558 }
0x262d   :  { %v1561_v37 = vadd.f32 %v1559_v3, %v1551_v9 }
0x262f   :  { %2034 = vtanh.f32 %v1561_v37 }
0x2639   :  { %v2035_v20 = vpop.eup %2034 }
0x263a   :  { %1564 = vrot.lane.b32.xlu1 %v2035_v20, %s2205_s15 }
0x26ac   :  { %v1565_v24 = vpop.permute.xlu1 %1564 }
0x26ad   :  { %v1567_v2 = vmul.f32 %v1565_v24, %v1550_v63 }
0x26af   :  { %v1569_v54 = vpack.c.bf16 %v1567_v2, %v1567_v2 }
0x26b1   :  { %1571 = vrot.lane.b32.xlu0 %v1569_v54, %s2217_s5 }
0x2723   :  { %v1572_v13 = vpop.permute.xlu0 %1571 }
0x2724   :  { %1935 = vmatmul.mubr.msk.bf16.vlgmr.msra.gmra.mrb[36].mxu1 %vm236_vm5, %v1572_v13 }
0x27f7   :  { %v1610_v6 = vpop.f32.mrb[36].mxu1 }
0x27f8   :  { %v1616_v15 = vadd.f32 %v1610_v6, %v1065_v14  ;;  %v1936_v17 = vpop.f32.mrb[37].mxu1 }
0x27f9   :  { %v1613_v21 = vpop.f32.mrb[38].mxu1 }
0x27fa   :  { %2036 = vtanh.f32 %v1616_v15  ;;  %v1937_v23 = vpop.f32.mrb[39].mxu1 }
0x2804   :  { %v2037_v26 = vpop.eup %2036 }
0x2805   :  { %v1618_v10 = vmul.f32 %v2037_v26, %v2362_v25 }
0x2807   :  { %v1619_v28 = vadd.f32 %v1618_v10, %v2364_v27 }
0x2809   :  { %1622 = vrot.lane.b32.xlu1 %v1619_v28, %s2205_s15  ;;  %v1620_v32 = vmul.f32 %v1619_v28, %v1561_v37 }
0x287b   :  { %v1623_v12 = vpop.permute.xlu1 %1622 }
0x287c   :  { %v1625_v29 = vmul.f32 %v1623_v12, %v1619_v28 }
0x287e   :  { %1627 = vrot.lane.b32.xlu0 %v1625_v29, %s2217_s5 }
0x2882   :  { %952 = vrot.lane.b32.xlu0 %v2555_v59, %s2218_s6 }
0x28f0   :  { %v1628_v38 = vpop.permute.xlu0 %1627 }
0x28f1   :  { %v1630_v30 = vadd.f32 %v1628_v38, %v1620_v32 }
0x28f3   :  { %2038 = vtanh.f32 %v1630_v30  ;;  %1644 = vrot.lane.b32.xlu0 %v1630_v30, %s2218_s6 }
0x28f4   :  { %v953_v31 = vpop.permute.xlu0 %952 }
0x28f5   :  { %955 = vst.msk [vmem:[#allocation14] sm:$0xff] %vm236_vm5, %v953_v31 }
0x28fd   :  { %v2039_v25 = vpop.eup %2038 }
0x28fe   :  { %1633 = vrot.lane.b32.xlu1 %v2039_v25, %s2205_s15 }
0x2965   :  { %v1645_v27 = vpop.permute.xlu0 %1644 }
0x2966   :  { %1648 = vst.msk [vmem:[#allocation14 + $0x8] sm:$0xff] %vm236_vm5, %v1645_v27 }
0x2967   :  { %2161 = shalt.err (!%p2158_p2)
}
0x2968   :  { %s2162_s10 = scalar_lea.hbm %s2711_s8, 256 }
0x2969   :  { %p2163_p3 = scmp.ne.s32.totalorder %s2711_s8, %s2162_s10  ;;  %p2166_p4 = scmp.lt.u32.totalorder %s2162_s10, %s2711_s8 }
0x296b   :  { %p2168_p5 = pnand %p2166_p4, %p2163_p3 }
0x296d   :  { %2171 = shalt.err (!%p2168_p5)
}
0x296e   :  { %1672 = dma.vmem_to_hbm [thread:$0]  %s1667_s30, 256, %s2711_s8, [#allocation15], %s2209_s3, %s2209_s3, %s2210_s20  }
0x296f   :  { %s2220_s14 = smov [#allocation13]  }
0x2970   :  { %v1634_v59 = vpop.permute.xlu1 %1633  ;;  %s1654_s17 = sshll.u32 %s2220_s14, 4  ;;  %s1655_s17 = int_to_ptr.vmem [resolvable:$true] %s1654_s17 }
0x2971   :  { %v1636_v43 = vmul.f32 %v1634_v59, %v1619_v28  ;;  %s2172_s18 = scalar_lea.vmem %s1655_s17, 256  ;;  %p2177_p7 = scmp.lt.s32.totalorder %s1655_s17, %s1655_s17 }
0x2972   :  { %p2173_p6 = scmp.ne.s32.totalorder %s1655_s17, %s2172_s18  ;;  %p2178_p8 = scmp.lt.s32.totalorder %s2172_s18, %s2172_s18 }
0x2973   :  { %1638 = vrot.lane.b32.xlu1 %v1636_v43, %s2217_s5 }
0x2974   :  { %p2179_p9 = por %p2178_p8, %p2177_p7 }
0x2976   :  { %p2180_p10 = pnand %p2179_p9, %p2173_p6 }
0x29e5   :  { %v1639_v34 = vpop.permute.xlu1 %1638 }
0x29e6   :  { %1642 = vst.msk [vmem:[#allocation13 + $0x8] sm:$0xff] %vm236_vm5, %v1639_v34 }
0x29e7   :  { %2183 = shalt.err (!%p2180_p10)
}
0x29e8   :  { %s2184_s8 = scalar_lea.hbm %s2710_s7, 256 }
0x29e9   :  { %p2185_p11 = scmp.ne.s32.totalorder %s2710_s7, %s2184_s8  ;;  %p2188_p12 = scmp.lt.u32.totalorder %s2184_s8, %s2710_s7 }
0x29eb   :  { %p2190_p13 = pnand %p2188_p12, %p2185_p11 }
0x29ed   :  { %2193 = shalt.err (!%p2190_p13)
}
0x29ee   :  { %1660 = dma.vmem_to_hbm [thread:$0]  %s1655_s17, 256, %s2710_s7, [#allocation6], %s2209_s3, %s2209_s3, %s2210_s20  }
0x29ef   :  { %2200 = dma.done.wait [#allocation6], 256  }
0x29f0   :  { %2201 = vsyncadd [#allocation6], 4294967040 }
0x29f1   :  { %2202 = dma.done.wait [#allocation15], 256  }
0x29f2   :  { %2203 = vsyncadd [#allocation15], 4294967040 }
0x29f3   :  { %1679 = vsyncpa [#allocation5], 1 }
0x29f4   :  { %1680 = vsyncpa [#allocation8], 1 }
0x29f5   :  { %1681 = vsyncpa [#allocation11], 1 }
0x29f6   :  { %1682 = vsyncpa [#allocation6], 1 }
0x29f7   :  { %1683 = vsyncpa [#allocation15], 1 }

</bundles_post_ra>
